<compile_context>
chip_gen: v7x
topology: tpu7x:2x2x1
jax: 0.10.0
libtpu: 0.0.40
codegen_flags: <defaults>
</compile_context>

<pallas_src>
import functools
import math

import jax
import jax.numpy as jnp
from jax.experimental import pallas as pl
from jax.experimental.pallas import tpu as pltpu


# ---------------------------------------------------------------------------
# Kernel: one grid step == one batch element, all N nodes at once.
# ---------------------------------------------------------------------------
def _mha_kernel(xq_ref, xk_ref, xv_ref, bias_ref,
                wq_ref, bq_ref, wk_ref, bk_ref, wv_ref, bv_ref,
                wo_ref, bo_ref,
                out_ref,
                q3_ref, k3_ref, v3_ref,
                *, n_heads, d_k):
    N = out_ref.shape[1]
    T = out_ref.shape[2]
    D = out_ref.shape[3]

    # ---- im2col-fused temporal-context conv + value projection -------------
    # Single wide (N*T, K*D) @ (K*D, D) / (N*T, D) @ (D, D) matmuls:
    # bf16 operands, f32 accumulation.  1/sqrt(d_k) already folded into wq/bq.
    q2 = jnp.dot(xq_ref[0], wq_ref[...],
                 preferred_element_type=jnp.float32) + bq_ref[...]
    k2 = jnp.dot(xk_ref[0], wk_ref[...],
                 preferred_element_type=jnp.float32) + bk_ref[...]
    v2 = jnp.dot(xv_ref[0], wv_ref[...],
                 preferred_element_type=jnp.float32) + bv_ref[...]

    # ---- regroup rows (n*T + t) -> (N, T, D) through VMEM scratch ----------
    # T == 8 == sublane tile, so each slice is a whole tile (layout preserving)
    # and we avoid an in-kernel reshape.
    for n in range(N):
        q3_ref[n] = q2[n * T:(n + 1) * T, :]
        k3_ref[n] = k2[n * T:(n + 1) * T, :]
        v3_ref[n] = v2[n * T:(n + 1) * T, :]
    q3 = q3_ref[...]
    k3 = k3_ref[...]
    v3 = v3_ref[...]

    bias = bias_ref[0]                        # (T, T) additive mask bias, f32

    # ---- per-head attention, batched over the node axis --------------------
    # Output accumulator initialized with the broadcast output bias; each
    # head's context is pushed through its slice of W_o (no lane concatenate).
    out = jnp.broadcast_to(bo_ref[...], (N, T, D))
    for hh in range(n_heads):
        lo = hh * d_k
        qh = q3[:, :, lo:lo + d_k].astype(jnp.bfloat16)    # (N, T, d_k)
        kh = k3[:, :, lo:lo + d_k].astype(jnp.bfloat16)
        vh = v3[:, :, lo:lo + d_k].astype(jnp.bfloat16)

        s = jnp.einsum('nqd,nkd->nqk', qh, kh,
                       preferred_element_type=jnp.float32) + bias   # (N, T, T)
        s = s - jnp.max(s, axis=-1, keepdims=True)
        p = jnp.exp(s)
        p = p * pl.reciprocal(jnp.sum(p, axis=-1, keepdims=True), approx=True)

        ctx = jnp.einsum('nqk,nkd->nqd', p.astype(jnp.bfloat16), vh,
                         preferred_element_type=jnp.float32)        # (N, T, d_k)
        out = out + jnp.einsum('nqd,nde->nqe', ctx.astype(jnp.bfloat16),
                               wo_ref[hh],
                               preferred_element_type=jnp.float32)  # (N, T, D)

    out_ref[0] = out.astype(out_ref.dtype)


# ---------------------------------------------------------------------------
# Wrapper
# ---------------------------------------------------------------------------
def mha_temporal_context(params, query, key, value, mask=None):
    """MultiHeadAttentionAwareTemporalContex_q1d_k1d forward.

    query/key/value: (B, N, T, d_model) float32; mask: (B, T, T) or None.
    The query/key_multi_segment=True paths are numerically identical to this
    one when n_length == T, which holds for this module config.
    """
    B, N, T, D = query.shape
    h = params["h"]
    d_k = D // h
    K = params["ksize"]
    pad = (K - 1) // 2   # TODO(synk): assumes odd kernel_size ('same' conv).
    KD = K * D
    scale = 1.0 / math.sqrt(d_k)

    # im2col slab for the (1, K) temporal conv: (B, N*T, K*D), c = k*D + d_in.
    def im2col(x):
        xp = jnp.pad(x, ((0, 0), (0, 0), (pad, pad), (0, 0)))
        cols = [xp[:, :, k:k + T, :] for k in range(K)]
        return jnp.concatenate(cols, axis=-1).reshape(B, N * T, KD)

    xq = im2col(query).astype(jnp.bfloat16)
    xk = im2col(key).astype(jnp.bfloat16)
    xv = value.reshape(B, N * T, D).astype(jnp.bfloat16)

    # additive mask bias, computed once per batch (0 visible / -1e9 masked)
    if mask is None:
        bias = jnp.zeros((B, T, T), jnp.float32)
    else:
        bias = jnp.where(mask == 0, -1e9, 0.0).astype(jnp.float32)

    # conv taps flattened to (K*D, D); 1/sqrt(d_k) folded into the Q path;
    # output projection pre-split per head (and broadcast over nodes).
    wq = (params["wq"].reshape(KD, D) * scale).astype(jnp.bfloat16)
    bq = (params["bq"] * scale).astype(jnp.float32)
    wk = params["wk"].reshape(KD, D).astype(jnp.bfloat16)
    bk = params["bk"].astype(jnp.float32)
    wv = params["wv"].astype(jnp.bfloat16)
    bv = params["bv"].astype(jnp.float32)
    wo = jnp.broadcast_to(params["wo"].reshape(h, d_k, D)[:, None, :, :],
                          (h, N, d_k, D)).astype(jnp.bfloat16)
    bo = params["bo"].astype(jnp.float32)

    kernel = functools.partial(_mha_kernel, n_heads=h, d_k=d_k)

    return pl.pallas_call(
        kernel,
        out_shape=jax.ShapeDtypeStruct((B, N, T, D), jnp.float32),
        grid_spec=pltpu.PrefetchScalarGridSpec(
            num_scalar_prefetch=0,
            grid=(B,),
            in_specs=[
                pl.BlockSpec((1, N * T, KD), lambda b: (b, 0, 0)),    # q im2col
                pl.BlockSpec((1, N * T, KD), lambda b: (b, 0, 0)),    # k im2col
                pl.BlockSpec((1, N * T, D), lambda b: (b, 0, 0)),     # v
                pl.BlockSpec((1, T, T), lambda b: (b, 0, 0)),         # mask bias
                pl.BlockSpec((KD, D), lambda b: (0, 0)),              # W_q (scaled)
                pl.BlockSpec((1, D), lambda b: (0, 0)),               # b_q (scaled)
                pl.BlockSpec((KD, D), lambda b: (0, 0)),              # W_k
                pl.BlockSpec((1, D), lambda b: (0, 0)),               # b_k
                pl.BlockSpec((D, D), lambda b: (0, 0)),               # W_v
                pl.BlockSpec((1, D), lambda b: (0, 0)),               # b_v
                pl.BlockSpec((h, N, d_k, D), lambda b: (0, 0, 0, 0)), # W_o per head
                pl.BlockSpec((1, D), lambda b: (0, 0)),               # b_o
            ],
            out_specs=pl.BlockSpec((1, N, T, D), lambda b: (b, 0, 0, 0)),
            scratch_shapes=[pltpu.VMEM((N, T, D), jnp.float32)
                            for _ in range(3)],
        ),
        compiler_params=pltpu.CompilerParams(
            dimension_semantics=("parallel",)),
    )(xq, xk, xv, bias, wq, bq, wk, bk, wv, bv, wo, bo)


def layer_norm(x, gamma, beta, eps=1e-5):
    mu = jnp.mean(x, axis=-1, keepdims=True)
    var = jnp.mean(jnp.square(x - mu), axis=-1, keepdims=True)
    return (x - mu) * jax.lax.rsqrt(var + eps) * gamma + beta


def encoder_layer_forward(params, x, mask=None):
    """EncoderLayer sublayer[0]: x + dropout(self_attn(LN(x))), dropout p=0.
    # TODO(synk): sublayer[1] (feed_forward_gcn) is an external spatial-GCN
    # module not defined in this spec, so it is not implemented here.
    """
    xn = layer_norm(x, params["ln_g"], params["ln_b"])
    return x + mha_temporal_context(params, xn, xn, xn, mask)


# ---------------------------------------------------------------------------
# Plain-JAX f32 reference (matches the PyTorch forward) for verification.
# ---------------------------------------------------------------------------
def reference(params, query, key, value, mask=None):
    B, N, T, D = query.shape
    h = params["h"]
    d_k = D // h
    K = params["ksize"]
    pad = (K - 1) // 2

    def conv_proj(x, w, b):                  # w: (K, D_in, D_out)
        xp = jnp.pad(x, ((0, 0), (0, 0), (pad, pad), (0, 0)))
        out = jnp.zeros((B, N, T, D), jnp.float32) + b
        for k in range(K):
            out = out + jnp.einsum("bntd,de->bnte", xp[:, :, k:k + T, :], w[k],
                                   precision="highest")
        return out

    q = conv_proj(query, params["wq"], params["bq"][0])
    kk = conv_proj(key, params["wk"], params["bk"][0])
    v = jnp.einsum("bntd,de->bnte", value, params["wv"],
                   precision="highest") + params["bv"][0]

    def split(x):                            # channel c = head*d_k + dk
        return x.reshape(B, N, T, h, d_k).transpose(0, 1, 3, 2, 4)

    qh, kh, vh = split(q), split(kk), split(v)
    s = jnp.einsum("bnhtd,bnhsd->bnhts", qh, kh,
                   precision="highest") / math.sqrt(d_k)
    if mask is not None:
        s = jnp.where(mask[:, None, None, :, :] == 0, -1e9, s)
    p = jax.nn.softmax(s, axis=-1)
    ctx = jnp.einsum("bnhts,bnhsd->bnhtd", p, vh, precision="highest")
    ctx = ctx.transpose(0, 1, 3, 2, 4).reshape(B, N, T, D)
    return jnp.einsum("bntd,de->bnte", ctx, params["wo"],
                      precision="highest") + params["bo"][0]


def reference_encoder(params, x, mask=None):
    xn = layer_norm(x, params["ln_g"], params["ln_b"])
    return x + reference(params, xn, xn, xn, mask)


if __name__ == "__main__":
    # Module config: nb_head=4, d_model=32, num_of_lags=2, points_per_lag=4
    # -> T = n_length = 8; kernel_size = 3; dropout = 0.0
    B, N, T, D = 2, 4, 8, 32
    h, K = 4, 3
    init = 0.1

    root = jax.random.PRNGKey(0)
    ks = jax.random.split(root, 16)

    # PyTorch-shaped parameters, generated deterministically in-script.
    wq_t = init * jax.random.normal(ks[0], (D, D, 1, K), jnp.float32)  # Conv2d weight
    bq_t = init * jax.random.normal(ks[1], (D,), jnp.float32)
    wk_t = init * jax.random.normal(ks[2], (D, D, 1, K), jnp.float32)
    bk_t = init * jax.random.normal(ks[3], (D,), jnp.float32)
    wv_t = init * jax.random.normal(ks[4], (D, D), jnp.float32)        # Linear weight
    bv_t = init * jax.random.normal(ks[5], (D,), jnp.float32)
    wo_t = init * jax.random.normal(ks[6], (D, D), jnp.float32)
    bo_t = init * jax.random.normal(ks[7], (D,), jnp.float32)

    params = {
        "h": h, "ksize": K,
        # Conv2d weight (out, in, 1, K) -> (K, in, out) so x @ w[k] == torch conv
        "wq": jnp.transpose(wq_t[:, :, 0, :], (2, 1, 0)),
        "bq": bq_t.reshape(1, D),
        "wk": jnp.transpose(wk_t[:, :, 0, :], (2, 1, 0)),
        "bk": bk_t.reshape(1, D),
        # torch Linear: y = x @ W.T + b -> store W.T
        "wv": wv_t.T, "bv": bv_t.reshape(1, D),
        "wo": wo_t.T, "bo": bo_t.reshape(1, D),
        # EncoderLayer sublayer[0] LayerNorm
        "ln_g": 1.0 + init * jax.random.normal(ks[12], (D,), jnp.float32),
        "ln_b": init * jax.random.normal(ks[13], (D,), jnp.float32),
    }

    q = jax.random.normal(ks[8], (B, N, T, D), jnp.float32)
    k = jax.random.normal(ks[9], (B, N, T, D), jnp.float32)
    v = jax.random.normal(ks[10], (B, N, T, D), jnp.float32)
    x = jax.random.normal(ks[11], (B, N, T, D), jnp.float32)
    mask = jnp.broadcast_to(jnp.tril(jnp.ones((T, T), jnp.float32)), (B, T, T))

    def check(got, want, tag):
        got = jax.block_until_ready(got)
        assert got.shape == want.shape, (tag, got.shape, want.shape)
        abs_err = float(jnp.max(jnp.abs(got - want)))
        rel_err = float(jnp.linalg.norm((got - want).ravel())
                        / jnp.linalg.norm(want.ravel()))
        # bf16 matmul operands vs an f32 reference -> bf16-level tolerances
        assert abs_err < 1.5e-1 and rel_err < 5e-2, (tag, abs_err, rel_err)

    # 1) attention sublayer kernel (with a causal mask) vs f32 reference
    out = mha_temporal_context(params, q, k, v, mask)
    check(out, reference(params, q, k, v, mask), "attention")

    # 2) EncoderLayer sublayer[0]: pre-LN self-attention + residual (no mask)
    enc = encoder_layer_forward(params, x, mask=None)
    check(enc, reference_encoder(params, x, mask=None), "encoder_sublayer0")

    print("KERNEL_OK")
</pallas_src>

<mosaic_0001>
module attributes {stable_mosaic.version = 11 : i64} {
  func.func @_mha_kernel(%arg0: i32, %arg1: memref<1x32x96xbf16, #tpu.memory_space<vmem>>, %arg2: memref<1x32x96xbf16, #tpu.memory_space<vmem>>, %arg3: memref<1x32x32xbf16, #tpu.memory_space<vmem>>, %arg4: memref<1x8x8xf32, #tpu.memory_space<vmem>>, %arg5: memref<96x32xbf16, #tpu.memory_space<vmem>>, %arg6: memref<1x32xf32, #tpu.memory_space<vmem>>, %arg7: memref<96x32xbf16, #tpu.memory_space<vmem>>, %arg8: memref<1x32xf32, #tpu.memory_space<vmem>>, %arg9: memref<32x32xbf16, #tpu.memory_space<vmem>>, %arg10: memref<1x32xf32, #tpu.memory_space<vmem>>, %arg11: memref<4x4x8x32xbf16, #tpu.memory_space<vmem>>, %arg12: memref<1x32xf32, #tpu.memory_space<vmem>>, %arg13: memref<1x4x8x32xf32, #tpu.memory_space<vmem>>, %arg14: memref<4x8x32xf32, #tpu.memory_space<vmem>>, %arg15: memref<4x8x32xf32, #tpu.memory_space<vmem>>, %arg16: memref<4x8x32xf32, #tpu.memory_space<vmem>>) attributes {dimension_semantics = [#tpu.dimension_semantics<parallel>], iteration_bounds = array<i64: 2>, scalar_prefetch = 0 : i64, scratch_operands = 3 : i64, tpu.core_type = #tpu.core_type<tc>, window_params = [{transform_indices = @transform_0, window_bounds = array<i64: 1, 32, 96>}, {transform_indices = @transform_1, window_bounds = array<i64: 1, 32, 96>}, {transform_indices = @transform_2, window_bounds = array<i64: 1, 32, 32>}, {transform_indices = @transform_3, window_bounds = array<i64: 1, 8, 8>}, {pipeline_mode = #tpu.pipeline_mode<synchronous>, transform_indices = @transform_4, window_bounds = array<i64: 96, 32>}, {pipeline_mode = #tpu.pipeline_mode<synchronous>, transform_indices = @transform_5, window_bounds = array<i64: 1, 32>}, {pipeline_mode = #tpu.pipeline_mode<synchronous>, transform_indices = @transform_6, window_bounds = array<i64: 96, 32>}, {pipeline_mode = #tpu.pipeline_mode<synchronous>, transform_indices = @transform_7, window_bounds = array<i64: 1, 32>}, {pipeline_mode = #tpu.pipeline_mode<synchronous>, transform_indices = @transform_8, window_bounds = array<i64: 32, 32>}, {pipeline_mode = #tpu.pipeline_mode<synchronous>, transform_indices = @transform_9, window_bounds = array<i64: 1, 32>}, {pipeline_mode = #tpu.pipeline_mode<synchronous>, transform_indices = @transform_10, window_bounds = array<i64: 4, 4, 8, 32>}, {pipeline_mode = #tpu.pipeline_mode<synchronous>, transform_indices = @transform_11, window_bounds = array<i64: 1, 32>}, {transform_indices = @transform_12, window_bounds = array<i64: 1, 4, 8, 32>}]} {
    %c0 = arith.constant 0 : index
    %c0_0 = arith.constant 0 : index
    %c0_1 = arith.constant 0 : index
    %0 = vector.load %arg1[%c0, %c0_0, %c0_1] : memref<1x32x96xbf16, #tpu.memory_space<vmem>>, vector<1x32x96xbf16>
    %1 = vector.shape_cast %0 : vector<1x32x96xbf16> to vector<32x96xbf16>
    %c0_2 = arith.constant 0 : index
    %c0_3 = arith.constant 0 : index
    %2 = vector.load %arg5[%c0_2, %c0_3] : memref<96x32xbf16, #tpu.memory_space<vmem>>, vector<96x32xbf16>
    %cst = arith.constant dense<0.000000e+00> : vector<32x32xf32>
    %3 = tpu.matmul %1, %2, %cst {dimension_numbers = #tpu.dot_dimension_numbers<[1], [0], [0], [1], [0, 0, 1, 1], [], []>} : vector<32x96xbf16>, vector<96x32xbf16>, vector<32x32xf32> -> vector<32x32xf32>
    %c0_4 = arith.constant 0 : index
    %c0_5 = arith.constant 0 : index
    %4 = vector.load %arg6[%c0_4, %c0_5] : memref<1x32xf32, #tpu.memory_space<vmem>>, vector<1x32xf32>
    %5 = vector.broadcast %4 : vector<1x32xf32> to vector<32x32xf32>
    %6 = arith.addf %3, %5 : vector<32x32xf32>
    %c0_6 = arith.constant 0 : index
    %c0_7 = arith.constant 0 : index
    %c0_8 = arith.constant 0 : index
    %7 = vector.load %arg2[%c0_6, %c0_7, %c0_8] : memref<1x32x96xbf16, #tpu.memory_space<vmem>>, vector<1x32x96xbf16>
    %8 = vector.shape_cast %7 : vector<1x32x96xbf16> to vector<32x96xbf16>
    %c0_9 = arith.constant 0 : index
    %c0_10 = arith.constant 0 : index
    %9 = vector.load %arg7[%c0_9, %c0_10] : memref<96x32xbf16, #tpu.memory_space<vmem>>, vector<96x32xbf16>
    %cst_11 = arith.constant dense<0.000000e+00> : vector<32x32xf32>
    %10 = tpu.matmul %8, %9, %cst_11 {dimension_numbers = #tpu.dot_dimension_numbers<[1], [0], [0], [1], [0, 0, 1, 1], [], []>} : vector<32x96xbf16>, vector<96x32xbf16>, vector<32x32xf32> -> vector<32x32xf32>
    %c0_12 = arith.constant 0 : index
    %c0_13 = arith.constant 0 : index
    %11 = vector.load %arg8[%c0_12, %c0_13] : memref<1x32xf32, #tpu.memory_space<vmem>>, vector<1x32xf32>
    %12 = vector.broadcast %11 : vector<1x32xf32> to vector<32x32xf32>
    %13 = arith.addf %10, %12 : vector<32x32xf32>
    %c0_14 = arith.constant 0 : index
    %c0_15 = arith.constant 0 : index
    %c0_16 = arith.constant 0 : index
    %14 = vector.load %arg3[%c0_14, %c0_15, %c0_16] : memref<1x32x32xbf16, #tpu.memory_space<vmem>>, vector<1x32x32xbf16>
    %15 = vector.shape_cast %14 : vector<1x32x32xbf16> to vector<32x32xbf16>
    %c0_17 = arith.constant 0 : index
    %c0_18 = arith.constant 0 : index
    %16 = vector.load %arg9[%c0_17, %c0_18] : memref<32x32xbf16, #tpu.memory_space<vmem>>, vector<32x32xbf16>
    %cst_19 = arith.constant dense<0.000000e+00> : vector<32x32xf32>
    %17 = tpu.matmul %15, %16, %cst_19 {dimension_numbers = #tpu.dot_dimension_numbers<[1], [0], [0], [1], [0, 0, 1, 1], [], []>} : vector<32x32xbf16>, vector<32x32xbf16>, vector<32x32xf32> -> vector<32x32xf32>
    %c0_20 = arith.constant 0 : index
    %c0_21 = arith.constant 0 : index
    %18 = vector.load %arg10[%c0_20, %c0_21] : memref<1x32xf32, #tpu.memory_space<vmem>>, vector<1x32xf32>
    %19 = vector.broadcast %18 : vector<1x32xf32> to vector<32x32xf32>
    %20 = arith.addf %17, %19 : vector<32x32xf32>
    %21 = vector.extract_strided_slice %6 {offsets = [0, 0], sizes = [8, 32], strides = [1, 1]} : vector<32x32xf32> to vector<8x32xf32>
    %c0_22 = arith.constant 0 : index
    %c0_23 = arith.constant 0 : index
    %c0_24 = arith.constant 0 : index
    %22 = vector.load %arg14[%c0_22, %c0_23, %c0_24] : memref<4x8x32xf32, #tpu.memory_space<vmem>>, vector<1x8x32xf32>
    %23 = vector.shape_cast %22 : vector<1x8x32xf32> to vector<8x32xf32>
    %24 = vector.shape_cast %21 : vector<8x32xf32> to vector<1x8x32xf32>
    tpu.vector_store %arg14[%c0_22, %c0_23, %c0_24], %24 {strides = array<i32>} : memref<4x8x32xf32, #tpu.memory_space<vmem>>, vector<1x8x32xf32>,
    %25 = vector.extract_strided_slice %13 {offsets = [0, 0], sizes = [8, 32], strides = [1, 1]} : vector<32x32xf32> to vector<8x32xf32>
    %c0_25 = arith.constant 0 : index
    %c0_26 = arith.constant 0 : index
    %c0_27 = arith.constant 0 : index
    %26 = vector.load %arg15[%c0_25, %c0_26, %c0_27] : memref<4x8x32xf32, #tpu.memory_space<vmem>>, vector<1x8x32xf32>
    %27 = vector.shape_cast %26 : vector<1x8x32xf32> to vector<8x32xf32>
    %28 = vector.shape_cast %25 : vector<8x32xf32> to vector<1x8x32xf32>
    tpu.vector_store %arg15[%c0_25, %c0_26, %c0_27], %28 {strides = array<i32>} : memref<4x8x32xf32, #tpu.memory_space<vmem>>, vector<1x8x32xf32>,
    %29 = vector.extract_strided_slice %20 {offsets = [0, 0], sizes = [8, 32], strides = [1, 1]} : vector<32x32xf32> to vector<8x32xf32>
    %c0_28 = arith.constant 0 : index
    %c0_29 = arith.constant 0 : index
    %c0_30 = arith.constant 0 : index
    %30 = vector.load %arg16[%c0_28, %c0_29, %c0_30] : memref<4x8x32xf32, #tpu.memory_space<vmem>>, vector<1x8x32xf32>
    %31 = vector.shape_cast %30 : vector<1x8x32xf32> to vector<8x32xf32>
    %32 = vector.shape_cast %29 : vector<8x32xf32> to vector<1x8x32xf32>
    tpu.vector_store %arg16[%c0_28, %c0_29, %c0_30], %32 {strides = array<i32>} : memref<4x8x32xf32, #tpu.memory_space<vmem>>, vector<1x8x32xf32>,
    %33 = vector.extract_strided_slice %6 {offsets = [8, 0], sizes = [8, 32], strides = [1, 1]} : vector<32x32xf32> to vector<8x32xf32>
    %c1 = arith.constant 1 : index
    %c0_31 = arith.constant 0 : index
    %c0_32 = arith.constant 0 : index
    %34 = vector.load %arg14[%c1, %c0_31, %c0_32] : memref<4x8x32xf32, #tpu.memory_space<vmem>>, vector<1x8x32xf32>
    %35 = vector.shape_cast %34 : vector<1x8x32xf32> to vector<8x32xf32>
    %36 = vector.shape_cast %33 : vector<8x32xf32> to vector<1x8x32xf32>
    tpu.vector_store %arg14[%c1, %c0_31, %c0_32], %36 {strides = array<i32>} : memref<4x8x32xf32, #tpu.memory_space<vmem>>, vector<1x8x32xf32>,
    %37 = vector.extract_strided_slice %13 {offsets = [8, 0], sizes = [8, 32], strides = [1, 1]} : vector<32x32xf32> to vector<8x32xf32>
    %c1_33 = arith.constant 1 : index
    %c0_34 = arith.constant 0 : index
    %c0_35 = arith.constant 0 : index
    %38 = vector.load %arg15[%c1_33, %c0_34, %c0_35] : memref<4x8x32xf32, #tpu.memory_space<vmem>>, vector<1x8x32xf32>
    %39 = vector.shape_cast %38 : vector<1x8x32xf32> to vector<8x32xf32>
    %40 = vector.shape_cast %37 : vector<8x32xf32> to vector<1x8x32xf32>
    tpu.vector_store %arg15[%c1_33, %c0_34, %c0_35], %40 {strides = array<i32>} : memref<4x8x32xf32, #tpu.memory_space<vmem>>, vector<1x8x32xf32>,
    %41 = vector.extract_strided_slice %20 {offsets = [8, 0], sizes = [8, 32], strides = [1, 1]} : vector<32x32xf32> to vector<8x32xf32>
    %c1_36 = arith.constant 1 : index
    %c0_37 = arith.constant 0 : index
    %c0_38 = arith.constant 0 : index
    %42 = vector.load %arg16[%c1_36, %c0_37, %c0_38] : memref<4x8x32xf32, #tpu.memory_space<vmem>>, vector<1x8x32xf32>
    %43 = vector.shape_cast %42 : vector<1x8x32xf32> to vector<8x32xf32>
    %44 = vector.shape_cast %41 : vector<8x32xf32> to vector<1x8x32xf32>
    tpu.vector_store %arg16[%c1_36, %c0_37, %c0_38], %44 {strides = array<i32>} : memref<4x8x32xf32, #tpu.memory_space<vmem>>, vector<1x8x32xf32>,
    %45 = vector.extract_strided_slice %6 {offsets = [16, 0], sizes = [8, 32], strides = [1, 1]} : vector<32x32xf32> to vector<8x32xf32>
    %c2 = arith.constant 2 : index
    %c0_39 = arith.constant 0 : index
    %c0_40 = arith.constant 0 : index
    %46 = vector.load %arg14[%c2, %c0_39, %c0_40] : memref<4x8x32xf32, #tpu.memory_space<vmem>>, vector<1x8x32xf32>
    %47 = vector.shape_cast %46 : vector<1x8x32xf32> to vector<8x32xf32>
    %48 = vector.shape_cast %45 : vector<8x32xf32> to vector<1x8x32xf32>
    tpu.vector_store %arg14[%c2, %c0_39, %c0_40], %48 {strides = array<i32>} : memref<4x8x32xf32, #tpu.memory_space<vmem>>, vector<1x8x32xf32>,
    %49 = vector.extract_strided_slice %13 {offsets = [16, 0], sizes = [8, 32], strides = [1, 1]} : vector<32x32xf32> to vector<8x32xf32>
    %c2_41 = arith.constant 2 : index
    %c0_42 = arith.constant 0 : index
    %c0_43 = arith.constant 0 : index
    %50 = vector.load %arg15[%c2_41, %c0_42, %c0_43] : memref<4x8x32xf32, #tpu.memory_space<vmem>>, vector<1x8x32xf32>
    %51 = vector.shape_cast %50 : vector<1x8x32xf32> to vector<8x32xf32>
    %52 = vector.shape_cast %49 : vector<8x32xf32> to vector<1x8x32xf32>
    tpu.vector_store %arg15[%c2_41, %c0_42, %c0_43], %52 {strides = array<i32>} : memref<4x8x32xf32, #tpu.memory_space<vmem>>, vector<1x8x32xf32>,
    %53 = vector.extract_strided_slice %20 {offsets = [16, 0], sizes = [8, 32], strides = [1, 1]} : vector<32x32xf32> to vector<8x32xf32>
    %c2_44 = arith.constant 2 : index
    %c0_45 = arith.constant 0 : index
    %c0_46 = arith.constant 0 : index
    %54 = vector.load %arg16[%c2_44, %c0_45, %c0_46] : memref<4x8x32xf32, #tpu.memory_space<vmem>>, vector<1x8x32xf32>
    %55 = vector.shape_cast %54 : vector<1x8x32xf32> to vector<8x32xf32>
    %56 = vector.shape_cast %53 : vector<8x32xf32> to vector<1x8x32xf32>
    tpu.vector_store %arg16[%c2_44, %c0_45, %c0_46], %56 {strides = array<i32>} : memref<4x8x32xf32, #tpu.memory_space<vmem>>, vector<1x8x32xf32>,
    %57 = vector.extract_strided_slice %6 {offsets = [24, 0], sizes = [8, 32], strides = [1, 1]} : vector<32x32xf32> to vector<8x32xf32>
    %c3 = arith.constant 3 : index
    %c0_47 = arith.constant 0 : index
    %c0_48 = arith.constant 0 : index
    %58 = vector.load %arg14[%c3, %c0_47, %c0_48] : memref<4x8x32xf32, #tpu.memory_space<vmem>>, vector<1x8x32xf32>
    %59 = vector.shape_cast %58 : vector<1x8x32xf32> to vector<8x32xf32>
    %60 = vector.shape_cast %57 : vector<8x32xf32> to vector<1x8x32xf32>
    tpu.vector_store %arg14[%c3, %c0_47, %c0_48], %60 {strides = array<i32>} : memref<4x8x32xf32, #tpu.memory_space<vmem>>, vector<1x8x32xf32>,
    %61 = vector.extract_strided_slice %13 {offsets = [24, 0], sizes = [8, 32], strides = [1, 1]} : vector<32x32xf32> to vector<8x32xf32>
    %c3_49 = arith.constant 3 : index
    %c0_50 = arith.constant 0 : index
    %c0_51 = arith.constant 0 : index
    %62 = vector.load %arg15[%c3_49, %c0_50, %c0_51] : memref<4x8x32xf32, #tpu.memory_space<vmem>>, vector<1x8x32xf32>
    %63 = vector.shape_cast %62 : vector<1x8x32xf32> to vector<8x32xf32>
    %64 = vector.shape_cast %61 : vector<8x32xf32> to vector<1x8x32xf32>
    tpu.vector_store %arg15[%c3_49, %c0_50, %c0_51], %64 {strides = array<i32>} : memref<4x8x32xf32, #tpu.memory_space<vmem>>, vector<1x8x32xf32>,
    %65 = vector.extract_strided_slice %20 {offsets = [24, 0], sizes = [8, 32], strides = [1, 1]} : vector<32x32xf32> to vector<8x32xf32>
    %c3_52 = arith.constant 3 : index
    %c0_53 = arith.constant 0 : index
    %c0_54 = arith.constant 0 : index
    %66 = vector.load %arg16[%c3_52, %c0_53, %c0_54] : memref<4x8x32xf32, #tpu.memory_space<vmem>>, vector<1x8x32xf32>
    %67 = vector.shape_cast %66 : vector<1x8x32xf32> to vector<8x32xf32>
    %68 = vector.shape_cast %65 : vector<8x32xf32> to vector<1x8x32xf32>
    tpu.vector_store %arg16[%c3_52, %c0_53, %c0_54], %68 {strides = array<i32>} : memref<4x8x32xf32, #tpu.memory_space<vmem>>, vector<1x8x32xf32>,
    %c0_55 = arith.constant 0 : index
    %c0_56 = arith.constant 0 : index
    %c0_57 = arith.constant 0 : index
    %69 = vector.load %arg14[%c0_55, %c0_56, %c0_57] : memref<4x8x32xf32, #tpu.memory_space<vmem>>, vector<4x8x32xf32>
    %c0_58 = arith.constant 0 : index
    %c0_59 = arith.constant 0 : index
    %c0_60 = arith.constant 0 : index
    %70 = vector.load %arg15[%c0_58, %c0_59, %c0_60] : memref<4x8x32xf32, #tpu.memory_space<vmem>>, vector<4x8x32xf32>
    %c0_61 = arith.constant 0 : index
    %c0_62 = arith.constant 0 : index
    %c0_63 = arith.constant 0 : index
    %71 = vector.load %arg16[%c0_61, %c0_62, %c0_63] : memref<4x8x32xf32, #tpu.memory_space<vmem>>, vector<4x8x32xf32>
    %c0_64 = arith.constant 0 : index
    %c0_65 = arith.constant 0 : index
    %c0_66 = arith.constant 0 : index
    %72 = vector.load %arg4[%c0_64, %c0_65, %c0_66] : memref<1x8x8xf32, #tpu.memory_space<vmem>>, vector<1x8x8xf32>
    %73 = vector.shape_cast %72 : vector<1x8x8xf32> to vector<8x8xf32>
    %c0_67 = arith.constant 0 : index
    %c0_68 = arith.constant 0 : index
    %74 = vector.load %arg12[%c0_67, %c0_68] : memref<1x32xf32, #tpu.memory_space<vmem>>, vector<1x32xf32>
    %75 = vector.shape_cast %74 : vector<1x32xf32> to vector<1x1x32xf32>
    %76 = vector.broadcast %75 : vector<1x1x32xf32> to vector<4x8x32xf32>
    %77 = vector.extract_strided_slice %69 {offsets = [0, 0, 0], sizes = [4, 8, 8], strides = [1, 1, 1]} : vector<4x8x32xf32> to vector<4x8x8xf32>
    %78 = arith.truncf %77 : vector<4x8x8xf32> to vector<4x8x8xbf16>
    %79 = vector.extract_strided_slice %70 {offsets = [0, 0, 0], sizes = [4, 8, 8], strides = [1, 1, 1]} : vector<4x8x32xf32> to vector<4x8x8xf32>
    %80 = arith.truncf %79 : vector<4x8x8xf32> to vector<4x8x8xbf16>
    %81 = vector.extract_strided_slice %71 {offsets = [0, 0, 0], sizes = [4, 8, 8], strides = [1, 1, 1]} : vector<4x8x32xf32> to vector<4x8x8xf32>
    %82 = arith.truncf %81 : vector<4x8x8xf32> to vector<4x8x8xbf16>
    "tpu.trace_start"() <{level = 10 : i32, message = "nqd,nkd->nqk"}> : () -> ()
    %cst_69 = arith.constant dense<0.000000e+00> : vector<4x8x8xf32>
    %83 = tpu.matmul %78, %80, %cst_69 {dimension_numbers = #tpu.dot_dimension_numbers<[2], [2], [1], [1], [0, 0, 0, 1, 1, 1], [0], [0]>} : vector<4x8x8xbf16>, vector<4x8x8xbf16>, vector<4x8x8xf32> -> vector<4x8x8xf32>
    "tpu.trace_stop"() : () -> ()
    %84 = vector.shape_cast %73 : vector<8x8xf32> to vector<1x8x8xf32>
    %85 = vector.broadcast %84 : vector<1x8x8xf32> to vector<4x8x8xf32>
    %86 = arith.addf %83, %85 : vector<4x8x8xf32>
    %cst_70 = arith.constant dense<0xFF800000> : vector<4x8xf32>
    %87 = vector.multi_reduction <maximumf>, %86, %cst_70 [2] : vector<4x8x8xf32> to vector<4x8xf32>
    %88 = vector.shape_cast %87 : vector<4x8xf32> to vector<4x8x1xf32>
    %89 = vector.broadcast %88 : vector<4x8x1xf32> to vector<4x8x8xf32>
    %90 = arith.subf %86, %89 : vector<4x8x8xf32>
    %91 = math.exp %90 : vector<4x8x8xf32>
    %cst_71 = arith.constant dense<0.000000e+00> : vector<4x8xf32>
    %92 = vector.multi_reduction <add>, %91, %cst_71 [2] : vector<4x8x8xf32> to vector<4x8xf32>
    %93 = vector.shape_cast %92 : vector<4x8xf32> to vector<4x8x1xf32>
    %94 = tpu.reciprocal %93 {approx = true} : vector<4x8x1xf32> -> vector<4x8x1xf32>
    %95 = vector.broadcast %94 : vector<4x8x1xf32> to vector<4x8x8xf32>
    %96 = arith.mulf %91, %95 : vector<4x8x8xf32>
    %97 = arith.truncf %96 : vector<4x8x8xf32> to vector<4x8x8xbf16>
    "tpu.trace_start"() <{level = 10 : i32, message = "nqk,nkd->nqd"}> : () -> ()
    %cst_72 = arith.constant dense<0.000000e+00> : vector<4x8x8xf32>
    %98 = tpu.matmul %97, %82, %cst_72 {dimension_numbers = #tpu.dot_dimension_numbers<[2], [1], [1], [2], [0, 0, 0, 1, 1, 2], [0], [0]>} : vector<4x8x8xbf16>, vector<4x8x8xbf16>, vector<4x8x8xf32> -> vector<4x8x8xf32>
    "tpu.trace_stop"() : () -> ()
    %99 = arith.truncf %98 : vector<4x8x8xf32> to vector<4x8x8xbf16>
    %c0_73 = arith.constant 0 : index
    %c0_74 = arith.constant 0 : index
    %c0_75 = arith.constant 0 : index
    %c0_76 = arith.constant 0 : index
    %100 = vector.load %arg11[%c0_73, %c0_74, %c0_75, %c0_76] : memref<4x4x8x32xbf16, #tpu.memory_space<vmem>>, vector<1x4x8x32xbf16>
    %101 = vector.shape_cast %100 : vector<1x4x8x32xbf16> to vector<4x8x32xbf16>
    "tpu.trace_start"() <{level = 10 : i32, message = "nqd,nde->nqe"}> : () -> ()
    %cst_77 = arith.constant dense<0.000000e+00> : vector<4x8x32xf32>
    %102 = tpu.matmul %99, %101, %cst_77 {dimension_numbers = #tpu.dot_dimension_numbers<[2], [1], [1], [2], [0, 0, 0, 1, 1, 2], [0], [0]>} : vector<4x8x8xbf16>, vector<4x8x32xbf16>, vector<4x8x32xf32> -> vector<4x8x32xf32>
    "tpu.trace_stop"() : () -> ()
    %103 = arith.addf %76, %102 : vector<4x8x32xf32>
    %104 = vector.extract_strided_slice %69 {offsets = [0, 0, 8], sizes = [4, 8, 8], strides = [1, 1, 1]} : vector<4x8x32xf32> to vector<4x8x8xf32>
    %105 = arith.truncf %104 : vector<4x8x8xf32> to vector<4x8x8xbf16>
    %106 = vector.extract_strided_slice %70 {offsets = [0, 0, 8], sizes = [4, 8, 8], strides = [1, 1, 1]} : vector<4x8x32xf32> to vector<4x8x8xf32>
    %107 = arith.truncf %106 : vector<4x8x8xf32> to vector<4x8x8xbf16>
    %108 = vector.extract_strided_slice %71 {offsets = [0, 0, 8], sizes = [4, 8, 8], strides = [1, 1, 1]} : vector<4x8x32xf32> to vector<4x8x8xf32>
    %109 = arith.truncf %108 : vector<4x8x8xf32> to vector<4x8x8xbf16>
    "tpu.trace_start"() <{level = 10 : i32, message = "nqd,nkd->nqk"}> : () -> ()
    %cst_78 = arith.constant dense<0.000000e+00> : vector<4x8x8xf32>
    %110 = tpu.matmul %105, %107, %cst_78 {dimension_numbers = #tpu.dot_dimension_numbers<[2], [2], [1], [1], [0, 0, 0, 1, 1, 1], [0], [0]>} : vector<4x8x8xbf16>, vector<4x8x8xbf16>, vector<4x8x8xf32> -> vector<4x8x8xf32>
    "tpu.trace_stop"() : () -> ()
    %111 = vector.shape_cast %73 : vector<8x8xf32> to vector<1x8x8xf32>
    %112 = vector.broadcast %111 : vector<1x8x8xf32> to vector<4x8x8xf32>
    %113 = arith.addf %110, %112 : vector<4x8x8xf32>
    %cst_79 = arith.constant dense<0xFF800000> : vector<4x8xf32>
    %114 = vector.multi_reduction <maximumf>, %113, %cst_79 [2] : vector<4x8x8xf32> to vector<4x8xf32>
    %115 = vector.shape_cast %114 : vector<4x8xf32> to vector<4x8x1xf32>
    %116 = vector.broadcast %115 : vector<4x8x1xf32> to vector<4x8x8xf32>
    %117 = arith.subf %113, %116 : vector<4x8x8xf32>
    %118 = math.exp %117 : vector<4x8x8xf32>
    %cst_80 = arith.constant dense<0.000000e+00> : vector<4x8xf32>
    %119 = vector.multi_reduction <add>, %118, %cst_80 [2] : vector<4x8x8xf32> to vector<4x8xf32>
    %120 = vector.shape_cast %119 : vector<4x8xf32> to vector<4x8x1xf32>
    %121 = tpu.reciprocal %120 {approx = true} : vector<4x8x1xf32> -> vector<4x8x1xf32>
    %122 = vector.broadcast %121 : vector<4x8x1xf32> to vector<4x8x8xf32>
    %123 = arith.mulf %118, %122 : vector<4x8x8xf32>
    %124 = arith.truncf %123 : vector<4x8x8xf32> to vector<4x8x8xbf16>
    "tpu.trace_start"() <{level = 10 : i32, message = "nqk,nkd->nqd"}> : () -> ()
    %cst_81 = arith.constant dense<0.000000e+00> : vector<4x8x8xf32>
    %125 = tpu.matmul %124, %109, %cst_81 {dimension_numbers = #tpu.dot_dimension_numbers<[2], [1], [1], [2], [0, 0, 0, 1, 1, 2], [0], [0]>} : vector<4x8x8xbf16>, vector<4x8x8xbf16>, vector<4x8x8xf32> -> vector<4x8x8xf32>
    "tpu.trace_stop"() : () -> ()
    %126 = arith.truncf %125 : vector<4x8x8xf32> to vector<4x8x8xbf16>
    %c1_82 = arith.constant 1 : index
    %c0_83 = arith.constant 0 : index
    %c0_84 = arith.constant 0 : index
    %c0_85 = arith.constant 0 : index
    %127 = vector.load %arg11[%c1_82, %c0_83, %c0_84, %c0_85] : memref<4x4x8x32xbf16, #tpu.memory_space<vmem>>, vector<1x4x8x32xbf16>
    %128 = vector.shape_cast %127 : vector<1x4x8x32xbf16> to vector<4x8x32xbf16>
    "tpu.trace_start"() <{level = 10 : i32, message = "nqd,nde->nqe"}> : () -> ()
    %cst_86 = arith.constant dense<0.000000e+00> : vector<4x8x32xf32>
    %129 = tpu.matmul %126, %128, %cst_86 {dimension_numbers = #tpu.dot_dimension_numbers<[2], [1], [1], [2], [0, 0, 0, 1, 1, 2], [0], [0]>} : vector<4x8x8xbf16>, vector<4x8x32xbf16>, vector<4x8x32xf32> -> vector<4x8x32xf32>
    "tpu.trace_stop"() : () -> ()
    %130 = arith.addf %103, %129 : vector<4x8x32xf32>
    %131 = vector.extract_strided_slice %69 {offsets = [0, 0, 16], sizes = [4, 8, 8], strides = [1, 1, 1]} : vector<4x8x32xf32> to vector<4x8x8xf32>
    %132 = arith.truncf %131 : vector<4x8x8xf32> to vector<4x8x8xbf16>
    %133 = vector.extract_strided_slice %70 {offsets = [0, 0, 16], sizes = [4, 8, 8], strides = [1, 1, 1]} : vector<4x8x32xf32> to vector<4x8x8xf32>
    %134 = arith.truncf %133 : vector<4x8x8xf32> to vector<4x8x8xbf16>
    %135 = vector.extract_strided_slice %71 {offsets = [0, 0, 16], sizes = [4, 8, 8], strides = [1, 1, 1]} : vector<4x8x32xf32> to vector<4x8x8xf32>
    %136 = arith.truncf %135 : vector<4x8x8xf32> to vector<4x8x8xbf16>
    "tpu.trace_start"() <{level = 10 : i32, message = "nqd,nkd->nqk"}> : () -> ()
    %cst_87 = arith.constant dense<0.000000e+00> : vector<4x8x8xf32>
    %137 = tpu.matmul %132, %134, %cst_87 {dimension_numbers = #tpu.dot_dimension_numbers<[2], [2], [1], [1], [0, 0, 0, 1, 1, 1], [0], [0]>} : vector<4x8x8xbf16>, vector<4x8x8xbf16>, vector<4x8x8xf32> -> vector<4x8x8xf32>
    "tpu.trace_stop"() : () -> ()
    %138 = vector.shape_cast %73 : vector<8x8xf32> to vector<1x8x8xf32>
    %139 = vector.broadcast %138 : vector<1x8x8xf32> to vector<4x8x8xf32>
    %140 = arith.addf %137, %139 : vector<4x8x8xf32>
    %cst_88 = arith.constant dense<0xFF800000> : vector<4x8xf32>
    %141 = vector.multi_reduction <maximumf>, %140, %cst_88 [2] : vector<4x8x8xf32> to vector<4x8xf32>
    %142 = vector.shape_cast %141 : vector<4x8xf32> to vector<4x8x1xf32>
    %143 = vector.broadcast %142 : vector<4x8x1xf32> to vector<4x8x8xf32>
    %144 = arith.subf %140, %143 : vector<4x8x8xf32>
    %145 = math.exp %144 : vector<4x8x8xf32>
    %cst_89 = arith.constant dense<0.000000e+00> : vector<4x8xf32>
    %146 = vector.multi_reduction <add>, %145, %cst_89 [2] : vector<4x8x8xf32> to vector<4x8xf32>
    %147 = vector.shape_cast %146 : vector<4x8xf32> to vector<4x8x1xf32>
    %148 = tpu.reciprocal %147 {approx = true} : vector<4x8x1xf32> -> vector<4x8x1xf32>
    %149 = vector.broadcast %148 : vector<4x8x1xf32> to vector<4x8x8xf32>
    %150 = arith.mulf %145, %149 : vector<4x8x8xf32>
    %151 = arith.truncf %150 : vector<4x8x8xf32> to vector<4x8x8xbf16>
    "tpu.trace_start"() <{level = 10 : i32, message = "nqk,nkd->nqd"}> : () -> ()
    %cst_90 = arith.constant dense<0.000000e+00> : vector<4x8x8xf32>
    %152 = tpu.matmul %151, %136, %cst_90 {dimension_numbers = #tpu.dot_dimension_numbers<[2], [1], [1], [2], [0, 0, 0, 1, 1, 2], [0], [0]>} : vector<4x8x8xbf16>, vector<4x8x8xbf16>, vector<4x8x8xf32> -> vector<4x8x8xf32>
    "tpu.trace_stop"() : () -> ()
    %153 = arith.truncf %152 : vector<4x8x8xf32> to vector<4x8x8xbf16>
    %c2_91 = arith.constant 2 : index
    %c0_92 = arith.constant 0 : index
    %c0_93 = arith.constant 0 : index
    %c0_94 = arith.constant 0 : index
    %154 = vector.load %arg11[%c2_91, %c0_92, %c0_93, %c0_94] : memref<4x4x8x32xbf16, #tpu.memory_space<vmem>>, vector<1x4x8x32xbf16>
    %155 = vector.shape_cast %154 : vector<1x4x8x32xbf16> to vector<4x8x32xbf16>
    "tpu.trace_start"() <{level = 10 : i32, message = "nqd,nde->nqe"}> : () -> ()
    %cst_95 = arith.constant dense<0.000000e+00> : vector<4x8x32xf32>
    %156 = tpu.matmul %153, %155, %cst_95 {dimension_numbers = #tpu.dot_dimension_numbers<[2], [1], [1], [2], [0, 0, 0, 1, 1, 2], [0], [0]>} : vector<4x8x8xbf16>, vector<4x8x32xbf16>, vector<4x8x32xf32> -> vector<4x8x32xf32>
    "tpu.trace_stop"() : () -> ()
    %157 = arith.addf %130, %156 : vector<4x8x32xf32>
    %158 = vector.extract_strided_slice %69 {offsets = [0, 0, 24], sizes = [4, 8, 8], strides = [1, 1, 1]} : vector<4x8x32xf32> to vector<4x8x8xf32>
    %159 = arith.truncf %158 : vector<4x8x8xf32> to vector<4x8x8xbf16>
    %160 = vector.extract_strided_slice %70 {offsets = [0, 0, 24], sizes = [4, 8, 8], strides = [1, 1, 1]} : vector<4x8x32xf32> to vector<4x8x8xf32>
    %161 = arith.truncf %160 : vector<4x8x8xf32> to vector<4x8x8xbf16>
    %162 = vector.extract_strided_slice %71 {offsets = [0, 0, 24], sizes = [4, 8, 8], strides = [1, 1, 1]} : vector<4x8x32xf32> to vector<4x8x8xf32>
    %163 = arith.truncf %162 : vector<4x8x8xf32> to vector<4x8x8xbf16>
    "tpu.trace_start"() <{level = 10 : i32, message = "nqd,nkd->nqk"}> : () -> ()
    %cst_96 = arith.constant dense<0.000000e+00> : vector<4x8x8xf32>
    %164 = tpu.matmul %159, %161, %cst_96 {dimension_numbers = #tpu.dot_dimension_numbers<[2], [2], [1], [1], [0, 0, 0, 1, 1, 1], [0], [0]>} : vector<4x8x8xbf16>, vector<4x8x8xbf16>, vector<4x8x8xf32> -> vector<4x8x8xf32>
    "tpu.trace_stop"() : () -> ()
    %165 = vector.shape_cast %73 : vector<8x8xf32> to vector<1x8x8xf32>
    %166 = vector.broadcast %165 : vector<1x8x8xf32> to vector<4x8x8xf32>
    %167 = arith.addf %164, %166 : vector<4x8x8xf32>
    %cst_97 = arith.constant dense<0xFF800000> : vector<4x8xf32>
    %168 = vector.multi_reduction <maximumf>, %167, %cst_97 [2] : vector<4x8x8xf32> to vector<4x8xf32>
    %169 = vector.shape_cast %168 : vector<4x8xf32> to vector<4x8x1xf32>
    %170 = vector.broadcast %169 : vector<4x8x1xf32> to vector<4x8x8xf32>
    %171 = arith.subf %167, %170 : vector<4x8x8xf32>
    %172 = math.exp %171 : vector<4x8x8xf32>
    %cst_98 = arith.constant dense<0.000000e+00> : vector<4x8xf32>
    %173 = vector.multi_reduction <add>, %172, %cst_98 [2] : vector<4x8x8xf32> to vector<4x8xf32>
    %174 = vector.shape_cast %173 : vector<4x8xf32> to vector<4x8x1xf32>
    %175 = tpu.reciprocal %174 {approx = true} : vector<4x8x1xf32> -> vector<4x8x1xf32>
    %176 = vector.broadcast %175 : vector<4x8x1xf32> to vector<4x8x8xf32>
    %177 = arith.mulf %172, %176 : vector<4x8x8xf32>
    %178 = arith.truncf %177 : vector<4x8x8xf32> to vector<4x8x8xbf16>
    "tpu.trace_start"() <{level = 10 : i32, message = "nqk,nkd->nqd"}> : () -> ()
    %cst_99 = arith.constant dense<0.000000e+00> : vector<4x8x8xf32>
    %179 = tpu.matmul %178, %163, %cst_99 {dimension_numbers = #tpu.dot_dimension_numbers<[2], [1], [1], [2], [0, 0, 0, 1, 1, 2], [0], [0]>} : vector<4x8x8xbf16>, vector<4x8x8xbf16>, vector<4x8x8xf32> -> vector<4x8x8xf32>
    "tpu.trace_stop"() : () -> ()
    %180 = arith.truncf %179 : vector<4x8x8xf32> to vector<4x8x8xbf16>
    %c3_100 = arith.constant 3 : index
    %c0_101 = arith.constant 0 : index
    %c0_102 = arith.constant 0 : index
    %c0_103 = arith.constant 0 : index
    %181 = vector.load %arg11[%c3_100, %c0_101, %c0_102, %c0_103] : memref<4x4x8x32xbf16, #tpu.memory_space<vmem>>, vector<1x4x8x32xbf16>
    %182 = vector.shape_cast %181 : vector<1x4x8x32xbf16> to vector<4x8x32xbf16>
    "tpu.trace_start"() <{level = 10 : i32, message = "nqd,nde->nqe"}> : () -> ()
    %cst_104 = arith.constant dense<0.000000e+00> : vector<4x8x32xf32>
    %183 = tpu.matmul %180, %182, %cst_104 {dimension_numbers = #tpu.dot_dimension_numbers<[2], [1], [1], [2], [0, 0, 0, 1, 1, 2], [0], [0]>} : vector<4x8x8xbf16>, vector<4x8x32xbf16>, vector<4x8x32xf32> -> vector<4x8x32xf32>
    "tpu.trace_stop"() : () -> ()
    %184 = arith.addf %157, %183 : vector<4x8x32xf32>
    %c0_105 = arith.constant 0 : index
    %c0_106 = arith.constant 0 : index
    %c0_107 = arith.constant 0 : index
    %c0_108 = arith.constant 0 : index
    %185 = vector.load %arg13[%c0_105, %c0_106, %c0_107, %c0_108] : memref<1x4x8x32xf32, #tpu.memory_space<vmem>>, vector<1x4x8x32xf32>
    %186 = vector.shape_cast %185 : vector<1x4x8x32xf32> to vector<4x8x32xf32>
    %187 = vector.shape_cast %184 : vector<4x8x32xf32> to vector<1x4x8x32xf32>
    tpu.vector_store %arg13[%c0_105, %c0_106, %c0_107, %c0_108], %187 {strides = array<i32>} : memref<1x4x8x32xf32, #tpu.memory_space<vmem>>, vector<1x4x8x32xf32>,
    return
  }
  func.func @transform_0(%arg0: i32) -> (i32, i32, i32) {
    %c0_i32 = arith.constant 0 : i32
    %c0_i32_0 = arith.constant 0 : i32
    %c0_i32_1 = arith.constant 0 : i32
    return %arg0, %c0_i32, %c0_i32_0 : i32, i32, i32
  }
  func.func @transform_1(%arg0: i32) -> (i32, i32, i32) {
    %c0_i32 = arith.constant 0 : i32
    %c0_i32_0 = arith.constant 0 : i32
    %c0_i32_1 = arith.constant 0 : i32
    return %arg0, %c0_i32, %c0_i32_0 : i32, i32, i32
  }
  func.func @transform_2(%arg0: i32) -> (i32, i32, i32) {
    %c0_i32 = arith.constant 0 : i32
    %c0_i32_0 = arith.constant 0 : i32
    %c0_i32_1 = arith.constant 0 : i32
    return %arg0, %c0_i32, %c0_i32_0 : i32, i32, i32
  }
  func.func @transform_3(%arg0: i32) -> (i32, i32, i32) {
    %c0_i32 = arith.constant 0 : i32
    %c0_i32_0 = arith.constant 0 : i32
    %c0_i32_1 = arith.constant 0 : i32
    return %arg0, %c0_i32, %c0_i32_0 : i32, i32, i32
  }
  func.func @transform_4(%arg0: i32) -> (i32, i32) {
    %c0_i32 = arith.constant 0 : i32
    %c0_i32_0 = arith.constant 0 : i32
    %c0_i32_1 = arith.constant 0 : i32
    return %c0_i32, %c0_i32_0 : i32, i32
  }
  func.func @transform_5(%arg0: i32) -> (i32, i32) {
    %c0_i32 = arith.constant 0 : i32
    %c0_i32_0 = arith.constant 0 : i32
    %c0_i32_1 = arith.constant 0 : i32
    return %c0_i32, %c0_i32_0 : i32, i32
  }
  func.func @transform_6(%arg0: i32) -> (i32, i32) {
    %c0_i32 = arith.constant 0 : i32
    %c0_i32_0 = arith.constant 0 : i32
    %c0_i32_1 = arith.constant 0 : i32
    return %c0_i32, %c0_i32_0 : i32, i32
  }
  func.func @transform_7(%arg0: i32) -> (i32, i32) {
    %c0_i32 = arith.constant 0 : i32
    %c0_i32_0 = arith.constant 0 : i32
    %c0_i32_1 = arith.constant 0 : i32
    return %c0_i32, %c0_i32_0 : i32, i32
  }
  func.func @transform_8(%arg0: i32) -> (i32, i32) {
    %c0_i32 = arith.constant 0 : i32
    %c0_i32_0 = arith.constant 0 : i32
    %c0_i32_1 = arith.constant 0 : i32
    return %c0_i32, %c0_i32_0 : i32, i32
  }
  func.func @transform_9(%arg0: i32) -> (i32, i32) {
    %c0_i32 = arith.constant 0 : i32
    %c0_i32_0 = arith.constant 0 : i32
    %c0_i32_1 = arith.constant 0 : i32
    return %c0_i32, %c0_i32_0 : i32, i32
  }
  func.func @transform_10(%arg0: i32) -> (i32, i32, i32, i32) {
    %c0_i32 = arith.constant 0 : i32
    %c0_i32_0 = arith.constant 0 : i32
    %c0_i32_1 = arith.constant 0 : i32
    %c0_i32_2 = arith.constant 0 : i32
    %c0_i32_3 = arith.constant 0 : i32
    return %c0_i32, %c0_i32_0, %c0_i32_1, %c0_i32_2 : i32, i32, i32, i32
  }
  func.func @transform_11(%arg0: i32) -> (i32, i32) {
    %c0_i32 = arith.constant 0 : i32
    %c0_i32_0 = arith.constant 0 : i32
    %c0_i32_1 = arith.constant 0 : i32
    return %c0_i32, %c0_i32_0 : i32, i32
  }
  func.func @transform_12(%arg0: i32) -> (i32, i32, i32, i32) {
    %c0_i32 = arith.constant 0 : i32
    %c0_i32_0 = arith.constant 0 : i32
    %c0_i32_1 = arith.constant 0 : i32
    %c0_i32_2 = arith.constant 0 : i32
    return %arg0, %c0_i32, %c0_i32_0, %c0_i32_1 : i32, i32, i32, i32
  }
}

</mosaic_0001>

<bundles_post_ra>
// kernel: tpu_custom_call.1
= control target key start
LH: loop header
LB: loop body
LE: loop exit
PB: predicated region body
PF: predicated region fallthrough
CT: control target
= control target key end

     0   :  { %s5284_s0 = inlined_call_operand.vmem [shape: bf16[2,32,96], index: 0, kind: input, shape index: {}]   ;;  %s5285_s1 = inlined_call_operand.vmem [shape: bf16[2,32,96], index: 1, kind: input, shape index: {}]   ;;  %s5286_s2 = inlined_call_operand.hbm [shape: bf16[2,32,32], index: 2, kind: input, shape index: {}]   ;;  %s5287_s3 = inlined_call_operand.hbm [shape: f32[2,8,8], index: 3, kind: input, shape index: {}]   ;;  %s5288_s4 = inlined_call_operand.vmem [shape: bf16[96,32], index: 4, kind: input, shape index: {}]   ;;  %s5289_s5 = inlined_call_operand.vmem [shape: f32[1,32], index: 5, kind: input, shape index: {}]   ;;  %s5290_s6 = inlined_call_operand.vmem [shape: bf16[96,32], index: 6, kind: input, shape index: {}]   ;;  %s5291_s7 = inlined_call_operand.vmem [shape: f32[1,32], index: 7, kind: input, shape index: {}]   ;;  %s5292_s8 = inlined_call_operand.vmem [shape: bf16[32,32], index: 8, kind: input, shape index: {}]   ;;  %s5293_s9 = inlined_call_operand.vmem [shape: f32[1,32], index: 9, kind: input, shape index: {}]   ;;  %s5294_s10 = inlined_call_operand.vmem [shape: bf16[4,4,8,32], index: 10, kind: input, shape index: {}]   ;;  %s5295_s11 = inlined_call_operand.vmem [shape: f32[1,32], index: 11, kind: input, shape index: {}]   ;;  %s5296_s12 = inlined_call_operand.hbm [shape: f32[2,4,8,32], index: 12, kind: output, shape index: {}]  }
   0x1   :  { %5305 = sst [smem:[#allocation19_spill]] %s5286_s2 }
   0x2   :  { %5306 = sst [smem:[#allocation20_spill]] %s5296_s12 }
   0x3   :  { %17 = vsyncpa [#allocation6], 0 }
   0x4   :  { %19 = vsyncpa [#allocation6 + $0x1], 0 }
   0x5   :  { %20 = vsyncpa [#allocation9], 0 }
   0x6   :  { %22 = vsyncpa [#allocation9 + $0x1], 0 }
   0x7   :  { %23 = vsyncpa [#allocation7], 0 }
   0x8   :  { %25 = vsyncpa [#allocation7 + $0x1], 0  ;;  %s4545_s21 = smov 0   ;;  %s4547_s22 = smov 0  }
   0x9   :  { %s4549_s23 = smov 0   ;;  %s4551_s24 = smov 0  }
   0xa LB: > { %5307 = sst [smem:[#allocation14_spill]] %s4454_s21  ;;  %s4566_s25 = sadd.s32 4294967295, %s4466_s24   ;;  %s4466_s24 = sphi %s4551_s24, %s5327_s24   ;;  %s4462_s23 = sphi %s4549_s23, %s5329_s23   ;;  %s4458_s22 = sphi %s4547_s22, %s5331_s22   ;;  %s4454_s21 = sphi %s4545_s21, %s5330_s21  }
   0xb   : > { %5308 = sst [smem:[#allocation15_spill]] %s4462_s23  ;;  %s3580_s26 = sadd.s32 4294967294, %s4466_s24  }
   0xc   : > { %s4570_s27 = sadd.s32 1, %s4466_s24   ;;  %s90_s28 = sadd.s32 1, %s4462_s23 }
   0xd   : > { %5309 = sst [smem:[#allocation16_spill]] %s4570_s27  ;;  %s87_s29 = ssub.s32 %s4466_s24, %s4570_s27 }
   0xe   : > { %p97_p0 = scmp.ne.s32.totalorder %s4462_s23, %s4458_s22  ;;  %p88_p1 = scmp.eq.s32.totalorder %s87_s29, 0 }
   0xf   : > { %p98_p2 = scmp.eq.s32.totalorder %s4466_s24, 0  ;;  %p103_p3 = scmp.ne.s32.totalorder %s4458_s22, %s4454_s21 }
  0x10   : > { %p104_p4 = scmp.eq.s32.totalorder %s4566_s25, 0  ;;  %p321_p7 = scmp.eq.s32.totalorder %s4566_s25, 1 }
  0x11   : > { %s4582_s30 = scalar_select %p88_p1, %s4462_s23, %s90_s28  }
  0x12   : > { %p4584_p5 = por %p98_p2, %p97_p0  ;;  %p4588_p6 = por %p104_p4, %p103_p3 }
  0x13   : > { %5310 = sst [smem:[#allocation17_spill]] %s4582_s30  ;;  %p327_p8 = scmp.eq.s32.totalorder %s3580_s26, 1 }
  0x14   : > { %s5312_s14 = scalar_select %p4588_p6, 1, 0 }
  0x15   : > { %p4208_p10 = scmp.lt.s32.totalorder %s4466_s24, 2  ;;  %p4595_p11 = por %p321_p7, %p97_p0 }
  0x16   : > { %p4599_p12 = por %p327_p8, %p103_p3  ;;  %s4604_s17 = sand.u32 1, %s4462_s23  }
  0x17   : > { %s5313_s15 = scalar_select %p4595_p11, 1, 0 }
  0x18   : > { %s5314_s16 = scalar_select %p4599_p12, 1, 0 }
  0x19   : > { %s3691_s18 = sshll.u32 %s4466_s24, 8  ;;  %s3583_s19 = sshll.u32 %s4604_s17, 4 }
  0x1a   : > { %5315 = sst [smem:[#allocation18_spill]] %s5314_s16  ;;  %s5316_s2 = sld [smem:[#allocation19_spill]] }
  0x1b   : > { %s391_s29 = scalar_lea.vmem [#allocation5], %s3583_s19  ;;  %p4615_p13 = pnand %p4208_p10, %p4584_p5 }
  0x1c   : > { %s398_s30 = sshll.u32 %s391_s29, 4  ;;  %s388_s23 = scalar_lea.sflag [#allocation6], %s4604_s17  ;;  %s4619_s30 = int_to_ptr.vmem [resolvable:$true] %s398_s30 }
  0x1d   : > { %p4338_p1 = pneg %p4615_p13 }
  0x20   : > { %s4611_s26 = scalar_lea.hbm %s5316_s2, %s3691_s18  ;;  %s4341_s13 = scalar_lea.hbm %s5316_s2, 512 }
  0x21   : > { %s4336_s16 = scalar_lea.hbm %s4611_s26, 256  ;;  %p4342_p4 = scmp.lt.u32.totalorder %s4611_s26, %s5316_s2 }
  0x22   : > { %p4337_p0 = scmp.ne.s32.totalorder %s4611_s26, %s4336_s16  ;;  %p4343_p5 = scmp.lt.u32.totalorder %s4341_s13, %s4336_s16 }
  0x23   : > { %p4345_p8 = scmp.lt.u32.totalorder %s4336_s16, %s4611_s26 }
  0x24   : > { %p4339_p2 = pnand %p4338_p1, %p4337_p0  ;;  %p4344_p7 = por %p4343_p5, %p4342_p4 }
  0x26   : > { %p4340_p3 = pneg %p4339_p2  ;;  %p4346_p10 = por %p4345_p8, %p4344_p7 }
  0x28   : > { %p4347_p9 = pnand %p4346_p10, %p4340_p3 }
  0x2a   : > { %4350 = shalt.err (!%p4347_p9)
}
  0x2b   : > { %s4351_s29 = scalar_lea.vmem %s4619_s30, 256  ;;  %s4468_s18 = smov [#allocation5]  }
  0x2c   : > { %p4352_p0 = scmp.ne.s32.totalorder %s4619_s30, %s4351_s29  ;;  %s4356_s19 = sshll.u32 %s4468_s18, 4  ;;  %s4357_s19 = int_to_ptr.vmem [resolvable:$false] %s4356_s19 }
  0x2d   : > { %s4358_s20 = scalar_lea.vmem %s4357_s19, 512  ;;  %p4359_p11 = scmp.lt.s32.totalorder %s4619_s30, %s4357_s19 }
  0x2e   : > { %p4354_p2 = pnand %p4352_p0, %p4338_p1  ;;  %p4360_p4 = scmp.lt.s32.totalorder %s4358_s20, %s4351_s29 }
  0x30   : > { %p4355_p12 = pneg %p4354_p2  ;;  %p4361_p5 = por %p4360_p4, %p4359_p11 }
  0x32   : > { %p4362_p7 = pnand %p4361_p5, %p4355_p12 }
  0x34   : > { %4365 = shalt.err (!%p4362_p7)
}
  0x35   : > { %s4469_s16 = smov 64   ;;  %s4470_s13 = smov 4  }
  0x36   : > { %4200 = dma.hbm_to_vmem [thread:$0]  (!%p4615_p13), %s4611_s26, 256, %s4619_s30, %s388_s23, %s4469_s16, %s4469_s16, %s4470_s13  }
  0x37   : > { %p3588_p9 = scmp.ge.s32.totalorder %s4466_s24, 1  ;;  %p424_p3 = scmp.lt.s32.totalorder %s4466_s24, 3 }
  0x38   : > { %s3586_s28 = sshll.u32 %s4604_s17, 3  ;;  %s3587_s18 = sshll.u32 %s4466_s24, 7 }
  0x39   : > { %p4652_p11 = pnand %p3588_p9, %p424_p3  ;;  %s412_s19 = scalar_lea.vmem [#allocation8], %s3586_s28 }
  0x3a   : > { %s419_s20 = sshll.u32 %s412_s19, 4  ;;  %s4660_s12 = scalar_lea.hbm %s5287_s3, %s3587_s18  ;;  %s420_s20 = int_to_ptr.vmem [resolvable:$true] %s419_s20 }
  0x3b   : > { %s5318_s29 = scalar_select %p4652_p11, 1, 0 }
  0x3c   : > { %s409_s23 = scalar_lea.sflag [#allocation9], %s4604_s17  ;;  %s4366_s30 = scalar_lea.hbm %s4660_s12, 128 }
  0x3d   : > { %p4367_p12 = scmp.ne.s32.totalorder %s4660_s12, %s4366_s30  ;;  %s4371_s13 = scalar_lea.hbm %s5287_s3, 256 }
  0x3e   : > { %p4372_p0 = scmp.lt.u32.totalorder %s4660_s12, %s5287_s3  ;;  %p4373_p2 = scmp.lt.u32.totalorder %s4371_s13, %s4366_s30 }
  0x3f   : > { %p4369_p8 = pnand %p4367_p12, %p4338_p1  ;;  %p4375_p5 = scmp.lt.u32.totalorder %s4366_s30, %s4660_s12 }
  0x40   : > { %p4374_p4 = por %p4373_p2, %p4372_p0 }
  0x41   : > { %p4370_p10 = pneg %p4369_p8 }
  0x42   : > { %p4376_p7 = por %p4375_p5, %p4374_p4 }
  0x44   : > { %p4377_p9 = pnand %p4376_p7, %p4370_p10 }
  0x46   : > { %4380 = shalt.err (!%p4377_p9)
}
  0x47   : > { %s4381_s21 = scalar_lea.vmem %s420_s20, 128  ;;  %s4471_s17 = smov [#allocation8]  }
  0x48   : > { %p4382_p3 = scmp.ne.s32.totalorder %s420_s20, %s4381_s21  ;;  %s4386_s18 = sshll.u32 %s4471_s17, 4  ;;  %s4387_s18 = int_to_ptr.vmem [resolvable:$false] %s4386_s18 }
  0x49   : > { %s4388_s19 = scalar_lea.vmem %s4387_s18, 256  ;;  %p4389_p6 = scmp.lt.s32.totalorder %s420_s20, %s4387_s18 }
  0x4a   : > { %p4384_p12 = pnand %p4382_p3, %p4338_p1  ;;  %p4390_p11 = scmp.lt.s32.totalorder %s4388_s19, %s4381_s21 }
  0x4c   : > { %p4385_p8 = pneg %p4384_p12  ;;  %p4391_p0 = por %p4390_p11, %p4389_p6 }
  0x4e   : > { %p4392_p2 = pnand %p4391_p0, %p4385_p8 }
  0x50   : > { %4395 = shalt.err (!%p4392_p2)
}
  0x51   : > { %4203 = dma.hbm_to_vmem [thread:$0]  (!%p4615_p13), %s4660_s12, 128, %s420_s20, %s409_s23  }
  0x52   : > { %p5319_p10 = scmp.ne.s32.totalorder %s5318_s29, 0 }
  0x53   : > { %s4685_s30 = sand.u32 (!%p5319_p10), 1, %s4458_s22   ;;  %p5320_p6 = scmp.ne.s32.totalorder (!%p5319_p10), %s5312_s14, 0 }
  0x54   : > { %428 = sbr.rel (%p5319_p10) target bundleno = 3766 (0xeb6), region = 68  ;;  %s3589_s26 = sshll.u32 (!%p5319_p10), %s4685_s30, 4 }
  0x55   : > { %s431_s16 = scalar_lea.sflag (!%p5319_p10), [#allocation6], %s4685_s30  ;;  %s4689_s13 = scalar_lea.vmem (!%p5319_p10), [#allocation5], %s3589_s26 }
  0x5b   : > { %4441 = dma.done.wait (%p5320_p6), %s431_s16, 256  }
  0x5c   : > { %4443 = vsyncadd (%p5320_p6), %s431_s16, 4294967040  ;;  %s3590_s12 = sshll.u32 %s4685_s30, 3  ;;  %s440_s27 = scalar_lea.sflag [#allocation9], %s4685_s30 }
  0x5d   : > { %s4697_s29 = scalar_lea.vmem [#allocation8], %s3590_s12 }
  0x5e   : > { %4445 = dma.done.wait (%p5320_p6), %s440_s27, 128  }
  0x5f   : > { %4447 = vsyncadd (%p5320_p6), %s440_s27, 4294967168  ;;  %p499_p13 = scmp.lt.s32.totalorder %s4566_s25, 1  ;;  %v4251_v0 = vld [vmem:[%s5290_s6] sm:$0xff]   ;;  %v4252_v1 = vld [vmem:[%s5290_s6 + $0x8] sm:$0xff]   ;;  %vm579_vm0 = vcmask 785408   ;;  %vm796_vm1 = vcmask 261120  }
  0x60   : > { %3827 = vmatprep.subr.bf16.mxu1 %v4251_v0  ;;  %v4253_v2 = vld [vmem:[%s5288_s4] sm:$0xff]   ;;  %v4254_v3 = vld [vmem:[%s5290_s6 + $0x10] sm:$0xff]   ;;  %v4255_v4 = vld [vmem:[%s5288_s4 + $0x8] sm:$0xff]   ;;  %v4472_v20 = vmov 0.0   ;;  %vm4473_vm2 = vmmov 0   ;;  %vm905_vm3 = vcmask 64512  }
  0x61   : > { %s500_s21 = scalar_select %p499_p13, %s4566_s25, 1  ;;  %3828 = vmatpush3.bf16.msra.mxu1 %v4251_v0  ;;  %3811 = vmatprep.subr.bf16.mxu0 %v4253_v2  ;;  %v4257_v5 = vld [vmem:[%s5288_s4 + $0x10] sm:$0xff]   ;;  %v4256_v6 = vld [vmem:[%s5290_s6 + $0x18] sm:$0xff]   ;;  %v4258_v9 = vld [vmem:[%s5290_s6 + $0x20] sm:$0xff]   ;;  %vm1141_vm4 = vcmask 1043456  }
  0x62   : > { %3829 = vmatprep.subr.bf16.mxu1 %v4252_v1  ;;  %3812 = vmatpush3.bf16.msra.mxu0 %v4253_v2  ;;  %v4259_v7 = vld [vmem:[%s5288_s4 + $0x18] sm:$0xff]   ;;  %v4261_v10 = vld [vmem:[%s5288_s4 + $0x20] sm:$0xff]   ;;  %v4260_v12 = vld [vmem:[%s5290_s6 + $0x28] sm:$0xff]   ;;  %s4474_s2 = smov 120   ;;  %s4476_s19 = smov 104  }
  0x63   : > { %s3692_s12 = sshll.u32 %s500_s21, 4  ;;  %3813 = vmatprep.subr.bf16.mxu0 %v4255_v4  ;;  %v4264_v13 = vld [vmem:[%s5288_s4 + $0x28] sm:$0xff]   ;;  %v4267_v16 = vld [vmem:[%s5292_s8] sm:$0xff]   ;;  %s3591_s26 = sshll.u32 %s4685_s30, 5 }
  0x64   : > { %s508_s18 = scalar_lea.vmem %s5285_s1, %s3692_s12  ;;  %s503_s16 = scalar_lea.vmem %s5284_s0, %s3692_s12  ;;  %v4268_v17 = vld [vmem:[%s5292_s8 + $0x8] sm:$0xff]   ;;  %v4269_v18 = vld [vmem:[%s4689_s13] sm:$0xff]  }
  0x65   : > { %3830 = vmatpush3.bf16.msra.mxu1 %v4252_v1  ;;  %v4262_v8 = vld [vmem:[%s508_s18] sm:$0xff]   ;;  %v4263_v14 = vld [vmem:[%s508_s18 + $0x8] sm:$0xff]   ;;  %s3694_s20 = sshll.u32 %s4566_s25, 9  ;;  %s5321_s28 = sld [smem:[#allocation20_spill]] }
  0x66   : > { %3831 = vmatprep.subr.bf16.mxu1 %v4254_v3  ;;  %3814 = vmatpush3.bf16.msra.mxu0 %v4255_v4  ;;  %v4265_v11 = vld [vmem:[%s503_s16] sm:$0xff]   ;;  %v4266_v15 = vld [vmem:[%s503_s16 + $0x8] sm:$0xff]   ;;  %s4475_s16 = smov 112   ;;  %s3447_s17 = scalar_lea.sflag [#allocation7], %s4685_s30 }
  0x67   : > { %3815 = vmatprep.subr.bf16.mxu0 %v4257_v5  ;;  %3839 = vmatprep.mubr.msk.bf16.mxu1 %vm579_vm0, %v4262_v8  ;;  %v4270_v19 = vld [vmem:[%s4689_s13 + $0x8] sm:$0xff]   ;;  %v3607_v21 = vld [vmem:[%s5291_s7] ss:$0 sm:$0xff]  ;;  %p5322_p11 = scmp.ne.s32.totalorder %s5313_s15, 0  ;;  %s4477_s25 = smov [#allocation10]  }
  0x68   : > { %3823 = vmatprep.mubr.msk.bf16.mxu0 %vm579_vm0, %v4265_v11  ;;  %v3596_v23 = vld [vmem:[%s5289_s5] ss:$0 sm:$0xff]  ;;  %s4400_s14 = sshll.u32 %s4477_s25, 4  ;;  %s4401_s14 = int_to_ptr.vmem [resolvable:$false] %s4400_s14 }
  0x69   : > { %3832 = vmatpush3.bf16.msra.mxu1 %v4254_v3  ;;  %v3618_v59 = vld [vmem:[%s5293_s9] ss:$0 sm:$0xff] }
  0x6a   : > { %3833 = vmatprep.subr.bf16.mxu1 %v4256_v6  ;;  %3816 = vmatpush3.bf16.msra.mxu0 %v4257_v5 }
  0x6b   : > { %3817 = vmatprep.subr.bf16.mxu0 %v4259_v7 }
  0x6d   : > { %3834 = vmatpush3.bf16.msra.mxu1 %v4256_v6 }
  0x6e   : > { %3835 = vmatprep.subr.bf16.mxu1 %v4258_v9  ;;  %3818 = vmatpush3.bf16.msra.mxu0 %v4259_v7 }
  0x6f   : > { %3819 = vmatprep.subr.bf16.mxu0 %v4261_v10 }
  0x71   : > { %3836 = vmatpush3.bf16.msra.mxu1 %v4258_v9 }
  0x72   : > { %3837 = vmatprep.subr.bf16.mxu1 %v4260_v12  ;;  %3820 = vmatpush3.bf16.msra.mxu0 %v4261_v10  ;;  %v4843_v10 = vld [vmem:[%s4697_s29] sm:$0xff] }
  0x73   : > { %3821 = vmatprep.subr.bf16.mxu0 %v4264_v13 }
  0x75   : > { %3838 = vmatpush3.bf16.msra.mxu1 %v4260_v12 }
  0x76   : > { %3822 = vmatpush3.bf16.msra.mxu0 %v4264_v13  ;;  %3851 = vmatprep.subr.bf16.mxu1 %v4472_v20 }
  0x77   : > { %3843 = vmatprep.subr.bf16.mxu0 %v4267_v16 }
  0x78   : > { %3840 = vmatmul.mubr.msk.bf16.vlgmr.msra.gmra.mrb[0].mxu1 %vm579_vm0, %v4263_v14 }
  0x79   : > { %3824 = vmatmul.mubr.msk.bf16.vlgmr.msra.gmra.mrb[0].mxu0 %vm579_vm0, %v4266_v15  ;;  %3853 = vmatprep.mubr.msk.bf16.mxu1 %vm4473_vm2, %v4472_v20 }
  0x7a   : > { %3844 = vmatpush3.bf16.msra.mxu0 %v4267_v16  ;;  %3847 = vmatprep.mubr.msk.bf16.mxu0 %vm796_vm1, %v4269_v18 }
  0x7b   : > { %3845 = vmatprep.subr.bf16.mxu0 %v4268_v17 }
  0x7e   : > { %3846 = vmatpush3.bf16.msra.mxu0 %v4268_v17 }
  0x7f   : > { %3857 = vmatprep.subr.bf16.mxu0 %v4472_v20 }
  0x81   : > { %3848 = vmatmul.mubr.msk.bf16.vlgmr.msra.gmra.mrb[4].mxu0 %vm796_vm1, %v4270_v19 }
  0x82   : > { %3859 = vmatprep.mubr.msk.bf16.mxu0 %vm4473_vm2, %v4472_v20 }
 0x14b   : > { %v3841_v22 = vpop.f32.mrb[0].mxu1 }
 0x14c   : > { %v753_v24 = vadd.f32 %v3841_v22, %v3607_v21  ;;  %v744_v25 = vpop.f32.mrb[1].mxu1  ;;  %v3825_v28 = vpop.f32.mrb[0].mxu0 }
 0x14d   : > { %v745_v26 = vadd.f32 %v3607_v21, %v744_v25  ;;  %v3842_v27 = vpop.f32.mrb[2].mxu1  ;;  %v629_v31 = vadd.f32 %v3825_v28, %v3596_v23  ;;  %v620_v32 = vpop.f32.mrb[1].mxu0 }
 0x14e   : > { %864 = vst.msk [vmem:[#allocation3 + $0x10] sm:$0xff] %vm796_vm1, %v753_v24  ;;  %v756_v29 = vadd.f32 %v3842_v27, %v3607_v21  ;;  %v747_v30 = vpop.f32.mrb[3].mxu1  ;;  %v621_v34 = vadd.f32 %v3596_v23, %v620_v32  ;;  %v3826_v35 = vpop.f32.mrb[2].mxu0 }
 0x14f   : > { %853 = vst.msk [vmem:[#allocation3] sm:$0xff] %vm796_vm1, %v745_v26  ;;  %v748_v33 = vadd.f32 %v3607_v21, %v747_v30  ;;  %862 = vst.msk [vmem:[#allocation2 + $0x10] sm:$0xff] %vm796_vm1, %v629_v31  ;;  %v632_v36 = vadd.f32 %v3826_v35, %v3596_v23  ;;  %v623_v37 = vpop.f32.mrb[3].mxu0 }
 0x150   : > { %870 = vst.msk [vmem:[#allocation3 + $0x18] sm:$0xff] %vm796_vm1, %v756_v29  ;;  %852 = vst.msk [vmem:[#allocation2] sm:$0xff] %vm796_vm1, %v621_v34  ;;  %v624_v38 = vadd.f32 %v3596_v23, %v623_v37 }
 0x151   : > { %858 = vst.msk [vmem:[#allocation3 + $0x8] sm:$0xff] %vm796_vm1, %v748_v33  ;;  %868 = vst.msk [vmem:[#allocation2 + $0x18] sm:$0xff] %vm796_vm1, %v632_v36 }
 0x152   : > { %856 = vst.msk [vmem:[#allocation2 + $0x8] sm:$0xff] %vm796_vm1, %v624_v38 }
 0x154   : > { %v3849_v60 = vpop.f32.mrb[4].mxu0 }
 0x155   : > { %v879_v45 = vld [vmem:[#allocation3 + $0x10] sm:$0xff]  ;;  %v846_v61 = vadd.f32 %v3849_v60, %v3618_v59  ;;  %v837_v62 = vpop.f32.mrb[5].mxu0 }
 0x156   : > { %v877_v39 = vld [vmem:[#allocation3] sm:$0xff]  ;;  %v4792_v49 = vpack.c.bf16 %v879_v45, %v879_v45  ;;  %v875_v55 = vld [vmem:[#allocation2 + $0x10] sm:$0xff]  ;;  %v838_v63 = vadd.f32 %v3618_v59, %v837_v62  ;;  %v3850_v0 = vpop.f32.mrb[6].mxu0 }
 0x157   : > { %v4781_v40 = vpack.c.bf16 %v877_v39, %v877_v39  ;;  %v873_v44 = vld [vmem:[#allocation2] sm:$0xff]  ;;  %v880_v47 = vld [vmem:[#allocation3 + $0x18] sm:$0xff]  ;;  %v4813_v57 = vpack.c.bf16 %v875_v55, %v875_v55  ;;  %866 = vst.msk [vmem:[#allocation4 + $0x10] sm:$0xff] %vm796_vm1, %v846_v61  ;;  %v849_v1 = vadd.f32 %v3850_v0, %v3618_v59  ;;  %v840_v2 = vpop.f32.mrb[7].mxu0 }
 0x158   : > { %v878_v41 = vld [vmem:[#allocation3 + $0x8] sm:$0xff]  ;;  %v4790_v48 = vpack.c.bf16 %v873_v44, %v873_v44  ;;  %v4795_v51 = vpack.c.bf16 %v880_v47, %v880_v47  ;;  %v1002_v52 = vsel %vm905_vm3, %v4792_v49, 0  ;;  %v876_v56 = vld [vmem:[#allocation2 + $0x18] sm:$0xff]  ;;  %854 = vst.msk [vmem:[#allocation4] sm:$0xff] %vm796_vm1, %v838_v63  ;;  %v841_v3 = vadd.f32 %v3618_v59, %v840_v2 }
 0x159   : > { %v910_v42 = vsel %vm905_vm3, %v4781_v40, 0  ;;  %v4785_v43 = vpack.c.bf16 %v878_v41, %v878_v41  ;;  %v874_v50 = vld [vmem:[#allocation2 + $0x8] sm:$0xff]  ;;  %v4817_v58 = vpack.c.bf16 %v876_v56, %v876_v56  ;;  %872 = vst.msk [vmem:[#allocation4 + $0x18] sm:$0xff] %vm796_vm1, %v849_v1 }
 0x15a   : > { %3852 = vmatpush3.bf16.xpose.msra.mxu1 %v910_v42  ;;  %v4801_v53 = vpack.c.bf16 %v874_v50, %v874_v50  ;;  %v1048_v54 = vsel %vm905_vm3, %v4795_v51, 0  ;;  %860 = vst.msk [vmem:[#allocation4 + $0x8] sm:$0xff] %vm796_vm1, %v841_v3 }
 0x15b   : > { %v956_v46 = vsel %vm905_vm3, %v4785_v43, 0  ;;  %3863 = vmatprep.subr.bf16.mxu1 %v4472_v20 }
 0x15c   : > { %3858 = vmatpush3.bf16.xpose.msra.mxu0 %v956_v46 }
 0x15d   : > { %3869 = vmatprep.subr.bf16.mxu0 %v4472_v20 }
 0x15e   : > { %v883_v3 = vld [vmem:[#allocation4 + $0x10] sm:$0xff] }
 0x15f   : > { %v881_v4 = vld [vmem:[#allocation4] sm:$0xff] }
 0x160   : > { %v4832_v6 = vpack.c.bf16 %v881_v4, %v881_v4 }
 0x161   : > { %3854 = vmatmul.mubr.msk.bf16.vlgmr.msra.gmra.mrb[4].mxu1 %vm905_vm3, %v4790_v48  ;;  %v882_v5 = vld [vmem:[#allocation4 + $0x8] sm:$0xff] }
 0x162   : > { %3864 = vmatpush3.bf16.xpose.msra.mxu1 %v1002_v52  ;;  %3865 = vmatprep.mubr.msk.bf16.mxu1 %vm4473_vm2, %v4472_v20  ;;  %v4834_v7 = vpack.c.bf16 %v882_v5, %v882_v5  ;;  %v1143_v8 = vsel %vm1141_vm4, %v4832_v6, 0 }
 0x163   : > { %3860 = vmatmul.mubr.msk.bf16.vlgmr.msra.gmra.mrb[8].mxu0 %vm905_vm3, %v4801_v53  ;;  %3875 = vmatprep.subr.bf16.mxu1 %v4472_v20 }
 0x164   : > { %3870 = vmatpush3.bf16.xpose.msra.mxu0 %v1048_v54  ;;  %3871 = vmatprep.mubr.msk.bf16.mxu0 %vm4473_vm2, %v4472_v20  ;;  %v1189_v9 = vsel %vm1141_vm4, %v4834_v7, 0 }
 0x165   : > { %3881 = vmatprep.subr.bf16.mxu0 %v4472_v20 }
 0x169   : > { %3866 = vmatmul.mubr.msk.bf16.vlgmr.msra.gmra.mrb[8].mxu1 %vm905_vm3, %v4813_v57 }
 0x16a   : > { %3877 = vmatprep.mubr.msk.bf16.mxu1 %vm4473_vm2, %v4472_v20  ;;  %3876 = vmatpush3.bf16.msra.mxu1 %v1143_v8 }
 0x16b   : > { %3872 = vmatmul.mubr.msk.bf16.vlgmr.msra.gmra.mrb[12].mxu0 %vm905_vm3, %v4817_v58  ;;  %3887 = vmatprep.subr.bf16.mxu1 %v4472_v20 }
 0x16c   : > { %3883 = vmatprep.mubr.msk.bf16.mxu0 %vm4473_vm2, %v4472_v20  ;;  %3882 = vmatpush3.bf16.msra.mxu0 %v1189_v9  ;;  %v4873_v9 = vpack.c.bf16 %v883_v3, %v883_v3 }
 0x16d   : > { %3893 = vmatprep.subr.bf16.mxu0 %v4472_v20 }
 0x234   : > { %v946_v11 = vpop.f32.mrb[4].mxu1 }
 0x235   : > { %v947_v12 = vadd.f32 %v946_v11, %v4843_v10  ;;  %v3855_v13 = vpop.f32.mrb[5].mxu1  ;;  %v884_v11 = vld [vmem:[#allocation4 + $0x18] sm:$0xff] }
 0x236   : > { %v949_v14 = vpop.f32.mrb[6].mxu1  ;;  %v992_v15 = vpop.f32.mrb[8].mxu0 }
 0x237   : > { %v993_v16 = vadd.f32 %v992_v15, %v4843_v10  ;;  %v3856_v17 = vpop.f32.mrb[7].mxu1  ;;  %v3861_v18 = vpop.f32.mrb[9].mxu0  ;;  %v1090_v19 = vsel %vm905_vm3, %v947_v12, -inf  ;;  %v1235_v15 = vsel %vm1141_vm4, %v4873_v9, 0 }
 0x238   : > { %v995_v21 = vpop.f32.mrb[10].mxu0  ;;  %1091 = vmax.xlane.f32.xlu0 %v1090_v19  ;;  %v1327_v19 = vld [vmem:[%s5294_s10] sm:$0xf] }
 0x239   : > { %v3862_v22 = vpop.f32.mrb[11].mxu0  ;;  %v1093_v23 = vsel %vm905_vm3, %v993_v16, -inf }
 0x23c   : > { %1094 = vmax.xlane.f32.xlu0 %v1093_v23  ;;  %v1038_v24 = vpop.f32.mrb[8].mxu1 }
 0x23d   : > { %v1039_v25 = vadd.f32 %v1038_v24, %v4843_v10  ;;  %v3867_v26 = vpop.f32.mrb[9].mxu1  ;;  %v1335_v24 = vsel %vm1141_vm4, %v1327_v19, 0 }
 0x23e   : > { %v1041_v27 = vpop.f32.mrb[10].mxu1  ;;  %v1084_v28 = vpop.f32.mrb[12].mxu0 }
 0x23f   : > { %v1085_v29 = vadd.f32 %v1084_v28, %v4843_v10  ;;  %v3868_v30 = vpop.f32.mrb[11].mxu1  ;;  %v3873_v31 = vpop.f32.mrb[13].mxu0  ;;  %v1096_v32 = vsel %vm905_vm3, %v1039_v25, -inf  ;;  %v1328_v28 = vld [vmem:[%s5294_s10 + $0x4] sm:$0xf] }
 0x240   : > { %v1087_v33 = vpop.f32.mrb[14].mxu0  ;;  %1097 = vmax.xlane.f32.xlu1 %v1096_v32  ;;  %v1329_v30 = vld [vmem:[%s5294_s10 + $0x8] sm:$0xf] }
 0x241   : > { %v3874_v34 = vpop.f32.mrb[15].mxu0  ;;  %v1099_v35 = vsel %vm905_vm3, %v1085_v29, -inf }
 0x242   : > { %v1427_v34 = vsel %vm1141_vm4, %v1329_v30, 0 }
 0x244   : > { %1100 = vmax.xlane.f32.xlu1 %v1099_v35 }
 0x2c5   : > { %v1092_v36 = vpop.xlane.xlu0 %1091 }
 0x2c6   : > { %v1102_v37 = vsub.f32 %v947_v12, %v1092_v36  ;;  %v1330_v36 = vld [vmem:[%s5294_s10 + $0xc] sm:$0xf] }
 0x2c8   : > { %v1106_v38 = vmul.f32 1.442695, %v1102_v37 }
 0x2c9   : > { %v1095_v39 = vpop.xlane.xlu0 %1094 }
 0x2ca   : > { %4271 = vpow2.f32 %v1106_v38  ;;  %v1103_v41 = vsub.f32 %v993_v16, %v1095_v39  ;;  %v4878_v16 = vpack.c.bf16 %v884_v11, %v884_v11 }
 0x2cc   : > { %v1108_v42 = vmul.f32 1.442695, %v1103_v41  ;;  %v1281_v22 = vsel %vm1141_vm4, %v4878_v16, 0 }
 0x2cd   : > { %v1098_v44 = vpop.xlane.xlu1 %1097 }
 0x2ce   : > { %4273 = vpow2.f32 %v1108_v42  ;;  %v1104_v45 = vsub.f32 %v1039_v25, %v1098_v44  ;;  %v1473_v44 = vsel %vm1141_vm4, %v1330_v36, 0 }
 0x2d0   : > { %v1110_v46 = vmul.f32 1.442695, %v1104_v45 }
 0x2d1   : > { %v1101_v47 = vpop.xlane.xlu1 %1100 }
 0x2d2   : > { %4275 = vpow2.f32 %v1110_v46  ;;  %v1105_v50 = vsub.f32 %v1085_v29, %v1101_v47  ;;  %v1381_v29 = vsel %vm1141_vm4, %v1328_v28, 0 }
 0x2d4   : > { %v4272_v52 = vpop.eup %4271  ;;  %v1112_v54 = vmul.f32 1.442695, %v1105_v50 }
 0x2d5   : > { %v1114_v55 = vsel %vm905_vm3, %v4272_v52, 0.0 }
 0x2d6   : > { %4277 = vpow2.f32 %v1112_v54  ;;  %1115 = vadd.xlane.f32.xlu0 %v1114_v55 }
 0x2d8   : > { %v4274_v56 = vpop.eup %4273 }
 0x2d9   : > { %v1117_v59 = vsel %vm905_vm3, %v4274_v56, 0.0 }
 0x2da   : > { %1118 = vadd.xlane.f32.xlu1 %v1117_v59 }
 0x2dc   : > { %v4276_v60 = vpop.eup %4275 }
 0x2dd   : > { %v1120_v61 = vsel %vm905_vm3, %v4276_v60, 0.0 }
 0x2de   : > { %1121 = vadd.xlane.f32.xlu0 %v1120_v61 }
 0x2e0   : > { %v4278_v62 = vpop.eup %4277 }
 0x2e1   : > { %v1123_v63 = vsel %vm905_vm3, %v4278_v62, 0.0 }
 0x2e2   : > { %1124 = vadd.xlane.f32.xlu1 %v1123_v63 }
 0x2f3   : > { %1575 = vrot.lane.b32.xlu1 %v4785_v43, %s4474_s2 }
 0x2f4   : > { %1523 = vrot.lane.b32.xlu0 %v4781_v40, %s4474_s2 }
 0x2f7   : > { %1520 = vrot.lane.b32.xlu1 %v4790_v48, %s4474_s2 }
 0x2f8   : > { %1627 = vrot.lane.b32.xlu0 %v4792_v49, %s4474_s2 }
 0x2fb   : > { %1572 = vrot.lane.b32.xlu1 %v4801_v53, %s4474_s2 }
 0x2fc   : > { %1624 = vrot.lane.b32.xlu0 %v4813_v57, %s4474_s2 }
 0x2ff   : > { %1679 = vrot.lane.b32.xlu1 %v4795_v51, %s4474_s2 }
 0x303   : > { %1676 = vrot.lane.b32.xlu1 %v4817_v58, %s4474_s2 }
 0x363   : > { %v1116_v0 = vpop.xlane.xlu0 %1115 }
 0x364   : > { %4279 = vrcp.f32 %v1116_v0 }
 0x367   : > { %v1119_v1 = vpop.xlane.xlu1 %1118 }
 0x368   : > { %4281 = vrcp.f32 %v1119_v1 }
 0x36b   : > { %v1122_v2 = vpop.xlane.xlu0 %1121 }
 0x36c   : > { %4283 = vrcp.f32 %v1122_v2 }
 0x36e   : > { %v4280_v4 = vpop.eup %4279 }
 0x36f   : > { %v1130_v5 = vmul.f32 %v4280_v4, %v4272_v52  ;;  %v1125_v8 = vpop.xlane.xlu1 %1124  ;;  %v1524_v47 = vpop.permute.xlu0 %1523 }
 0x370   : > { %4285 = vrcp.f32 %v1125_v8 }
 0x371   : > { %v1134_v12 = vpack.c.bf16 %v1130_v5, %v1130_v5 }
 0x372   : > { %v4282_v13 = vpop.eup %4281 }
 0x373   : > { %v1131_v14 = vmul.f32 %v4282_v13, %v4274_v56  ;;  %3878 = vmatmul.mubr.msk.bf16.vlgmr.msra.gmra.mrb[12].mxu1 %vm905_vm3, %v1134_v12  ;;  %v1576_v37 = vpop.permute.xlu1 %1575  ;;  %v1628_v4 = vpop.permute.xlu0 %1627 }
 0x374   : > { %3888 = vmatpush3.bf16.msra.mxu1 %v1235_v15  ;;  %3889 = vmatprep.mubr.msk.bf16.mxu1 %vm4473_vm2, %v4472_v20  ;;  %v1581_v3 = vsel %vm905_vm3, %v1576_v37, 0  ;;  %v1633_v5 = vsel %vm905_vm3, %v1628_v4, 0 }
 0x375   : > { %v1135_v17 = vpack.c.bf16 %v1131_v14, %v1131_v14  ;;  %3899 = vmatprep.subr.bf16.mxu1 %v4472_v20 }
 0x376   : > { %v4284_v18 = vpop.eup %4283 }
 0x377   : > { %v1132_v21 = vmul.f32 %v4284_v18, %v4276_v60  ;;  %3884 = vmatmul.mubr.msk.bf16.vlgmr.msra.gmra.mrb[16].mxu0 %vm905_vm3, %v1135_v17  ;;  %v1521_v52 = vpop.permute.xlu1 %1520  ;;  %v1529_v60 = vsel %vm905_vm3, %v1524_v47, 0  ;;  %v1625_v12 = vpop.permute.xlu0 %1624 }
 0x378   : > { %3894 = vmatpush3.bf16.msra.mxu0 %v1281_v22  ;;  %3895 = vmatprep.mubr.msk.bf16.mxu0 %vm4473_vm2, %v4472_v20 }
 0x379   : > { %v1136_v23 = vpack.c.bf16 %v1132_v21, %v1132_v21  ;;  %3905 = vmatprep.subr.bf16.mxu0 %v4472_v20 }
 0x37a   : > { %v4286_v25 = vpop.eup %4285 }
 0x37b   : > { %v1133_v26 = vmul.f32 %v4286_v25, %v4278_v62  ;;  %3890 = vmatmul.mubr.msk.bf16.vlgmr.msra.gmra.mrb[16].mxu1 %vm905_vm3, %v1136_v23  ;;  %v1573_v1 = vpop.permute.xlu1 %1572 }
 0x37c   : > { %3900 = vmatpush3.bf16.msra.mxu1 %v1335_v24  ;;  %3901 = vmatprep.mubr.msk.bf16.mxu1 %vm4473_vm2, %v4472_v20 }
 0x37d   : > { %v1137_v27 = vpack.c.bf16 %v1133_v26, %v1133_v26  ;;  %3911 = vmatprep.subr.bf16.mxu1 %v4472_v20 }
 0x37f   : > { %3896 = vmatmul.mubr.msk.bf16.vlgmr.msra.gmra.mrb[20].mxu0 %vm905_vm3, %v1137_v27  ;;  %v1680_v8 = vpop.permute.xlu1 %1679 }
 0x380   : > { %3907 = vmatprep.mubr.msk.bf16.mxu0 %vm4473_vm2, %v4472_v20  ;;  %3906 = vmatpush3.bf16.msra.mxu0 %v1381_v29  ;;  %v1685_v11 = vsel %vm905_vm3, %v1680_v8, 0 }
 0x381   : > { %3917 = vmatprep.subr.bf16.mxu0 %v4472_v20 }
 0x383   : > { %v1677_v13 = vpop.permute.xlu1 %1676 }
 0x446   : > { %v1179_v31 = vpop.f32.mrb[12].mxu1 }
 0x447   : > { %v1323_v32 = vpack.c.bf16 %v1179_v31, %v1179_v31  ;;  %v3879_v33 = vpop.f32.mrb[13].mxu1 }
 0x448   : > { %v1182_v35 = vpop.f32.mrb[14].mxu1 }
 0x449   : > { %v3880_v38 = vpop.f32.mrb[15].mxu1  ;;  %3902 = vmatmul.mubr.msk.bf16.vlgmr.msra.gmra.mrb[20].mxu1 %vm905_vm3, %v1323_v32 }
 0x44a   : > { %3912 = vmatpush3.bf16.msra.mxu1 %v1427_v34  ;;  %v1225_v39 = vpop.f32.mrb[16].mxu0  ;;  %3913 = vmatprep.mubr.msk.bf16.mxu1 %vm4473_vm2, %v4472_v20 }
 0x44b   : > { %v1324_v41 = vpack.c.bf16 %v1225_v39, %v1225_v39  ;;  %v3885_v42 = vpop.f32.mrb[17].mxu0  ;;  %3923 = vmatprep.subr.bf16.mxu1 %v4472_v20 }
 0x44c   : > { %v1228_v45 = vpop.f32.mrb[18].mxu0 }
 0x44d   : > { %v3886_v46 = vpop.f32.mrb[19].mxu0  ;;  %3908 = vmatmul.mubr.msk.bf16.vlgmr.msra.gmra.mrb[24].mxu0 %vm905_vm3, %v1324_v41 }
 0x44e   : > { %3918 = vmatpush3.bf16.msra.mxu0 %v1473_v44  ;;  %v1271_v50 = vpop.f32.mrb[16].mxu1  ;;  %3919 = vmatprep.mubr.msk.bf16.mxu0 %vm4473_vm2, %v4472_v20 }
 0x44f   : > { %v1325_v54 = vpack.c.bf16 %v1271_v50, %v1271_v50  ;;  %v3891_v55 = vpop.f32.mrb[17].mxu1  ;;  %3929 = vmatprep.subr.bf16.mxu0 %v4472_v20 }
 0x450   : > { %v1274_v56 = vpop.f32.mrb[18].mxu1 }
 0x451   : > { %v3892_v59 = vpop.f32.mrb[19].mxu1  ;;  %3914 = vmatmul.mubr.msk.bf16.vlgmr.msra.gmra.mrb[24].mxu1 %vm905_vm3, %v1325_v54 }
 0x452   : > { %v1317_v61 = vpop.f32.mrb[20].mxu0  ;;  %3925 = vmatprep.mubr.msk.bf16.mxu1 %vm4473_vm2, %v4472_v20 }
 0x453   : > { %v1326_v62 = vpack.c.bf16 %v1317_v61, %v1317_v61  ;;  %3924 = vmatpush3.bf16.xpose.msra.mxu1 %v1529_v60  ;;  %v3897_v63 = vpop.f32.mrb[21].mxu0 }
 0x454   : > { %v1320_v0 = vpop.f32.mrb[22].mxu0  ;;  %3935 = vmatprep.subr.bf16.mxu1 %v4472_v20 }
 0x455   : > { %v3898_v2 = vpop.f32.mrb[23].mxu0  ;;  %3920 = vmatmul.mubr.msk.bf16.vlgmr.msra.gmra.mrb[28].mxu0 %vm905_vm3, %v1326_v62 }
 0x456   : > { %3931 = vmatprep.mubr.msk.bf16.mxu0 %vm4473_vm2, %v4472_v20 }
 0x457   : > { %3930 = vmatpush3.bf16.xpose.msra.mxu0 %v1581_v3 }
 0x458   : > { %3941 = vmatprep.subr.bf16.mxu0 %v4472_v20 }
 0x45a   : > { %3926 = vmatmul.mubr.msk.bf16.vlgmr.msra.gmra.mrb[28].mxu1 %vm905_vm3, %v1521_v52 }
 0x45b   : > { %3936 = vmatpush3.bf16.xpose.msra.mxu1 %v1633_v5  ;;  %3937 = vmatprep.mubr.msk.bf16.mxu1 %vm4473_vm2, %v4472_v20 }
 0x45c   : > { %3947 = vmatprep.subr.bf16.mxu1 %v4472_v20 }
 0x45e   : > { %3932 = vmatmul.mubr.msk.bf16.vlgmr.msra.gmra.mrb[32].mxu0 %vm905_vm3, %v1573_v1 }
 0x45f   : > { %3942 = vmatpush3.bf16.xpose.msra.mxu0 %v1685_v11  ;;  %3943 = vmatprep.mubr.msk.bf16.mxu0 %vm4473_vm2, %v4472_v20 }
 0x460   : > { %3953 = vmatprep.subr.bf16.mxu0 %v4472_v20 }
 0x462   : > { %3938 = vmatmul.mubr.msk.bf16.vlgmr.msra.gmra.mrb[32].mxu1 %vm905_vm3, %v1625_v12 }
 0x463   : > { %3949 = vmatprep.mubr.msk.bf16.mxu1 %vm4473_vm2, %v4472_v20 }
 0x466   : > { %3944 = vmatmul.mubr.msk.bf16.vlgmr.msra.gmra.mrb[36].mxu0 %vm905_vm3, %v1677_v13 }
 0x467   : > { %3955 = vmatprep.mubr.msk.bf16.mxu0 %vm4473_vm2, %v4472_v20 }
 0x52d   : > { %v1565_v14 = vpop.f32.mrb[28].mxu1 }
 0x52e   : > { %v1566_v15 = vadd.f32 %v1565_v14, %v4843_v10  ;;  %v3927_v17 = vpop.f32.mrb[29].mxu1 }
 0x52f   : > { %v1568_v18 = vpop.f32.mrb[30].mxu1 }
 0x530   : > { %v3928_v19 = vpop.f32.mrb[31].mxu1  ;;  %v1727_v21 = vsel %vm905_vm3, %v1566_v15, -inf }
 0x531   : > { %v1617_v22 = vpop.f32.mrb[32].mxu0  ;;  %1728 = vmax.xlane.f32.xlu0 %v1727_v21 }
 0x532   : > { %v1618_v23 = vadd.f32 %v1617_v22, %v4843_v10  ;;  %v3933_v24 = vpop.f32.mrb[33].mxu0 }
 0x533   : > { %v1620_v25 = vpop.f32.mrb[34].mxu0 }
 0x534   : > { %v3934_v26 = vpop.f32.mrb[35].mxu0  ;;  %v1730_v27 = vsel %vm905_vm3, %v1618_v23, -inf }
 0x535   : > { %1731 = vmax.xlane.f32.xlu1 %v1730_v27  ;;  %v1669_v28 = vpop.f32.mrb[32].mxu1  ;;  %v3646_v27 = vld [vmem:[%s5294_s10 + $0x10] sm:$0xf] }
 0x536   : > { %v1670_v29 = vadd.f32 %v1669_v28, %v4843_v10  ;;  %v3939_v30 = vpop.f32.mrb[33].mxu1 }
 0x537   : > { %v1672_v31 = vpop.f32.mrb[34].mxu1 }
 0x538   : > { %v3940_v32 = vpop.f32.mrb[35].mxu1  ;;  %v1733_v33 = vsel %vm905_vm3, %v1670_v29, -inf }
 0x539   : > { %v1721_v34 = vpop.f32.mrb[36].mxu0  ;;  %1734 = vmax.xlane.f32.xlu0 %v1733_v33 }
 0x53a   : > { %v1722_v35 = vadd.f32 %v1721_v34, %v4843_v10  ;;  %v3945_v36 = vpop.f32.mrb[37].mxu0 }
 0x53b   : > { %v1724_v37 = vpop.f32.mrb[38].mxu0  ;;  %v3647_v36 = vld [vmem:[%s5294_s10 + $0x14] sm:$0xf] }
 0x53c   : > { %v3946_v38 = vpop.f32.mrb[39].mxu0  ;;  %v1736_v39 = vsel %vm905_vm3, %v1722_v35, -inf  ;;  %v2030_v37 = vsel %vm1141_vm4, %v3647_v36, 0 }
 0x53d   : > { %1737 = vmax.xlane.f32.xlu0 %v1736_v39  ;;  %v3648_v38 = vld [vmem:[%s5294_s10 + $0x18] sm:$0xf] }
 0x5be   : > { %v1729_v41 = vpop.xlane.xlu0 %1728 }
 0x5bf   : > { %v1739_v42 = vsub.f32 %v1566_v15, %v1729_v41 }
 0x5c1   : > { %v1743_v44 = vmul.f32 1.442695, %v1739_v42 }
 0x5c2   : > { %v1732_v45 = vpop.xlane.xlu1 %1731 }
 0x5c3   : > { %4287 = vpow2.f32 %v1743_v44  ;;  %v1740_v46 = vsub.f32 %v1618_v23, %v1732_v45  ;;  %v2076_v44 = vsel %vm1141_vm4, %v3648_v38, 0  ;;  %v3649_v45 = vld [vmem:[%s5294_s10 + $0x1c] sm:$0xf] }
 0x5c5   : > { %v1745_v47 = vmul.f32 1.442695, %v1740_v46 }
 0x5c6   : > { %v1735_v50 = vpop.xlane.xlu0 %1734 }
 0x5c7   : > { %4289 = vpow2.f32 %v1745_v47  ;;  %v1741_v52 = vsub.f32 %v1670_v29, %v1735_v50  ;;  %v1984_v29 = vsel %vm1141_vm4, %v3646_v27, 0 }
 0x5c9   : > { %v1747_v54 = vmul.f32 1.442695, %v1741_v52 }
 0x5ca   : > { %v1738_v63 = vpop.xlane.xlu0 %1737 }
 0x5cb   : > { %4291 = vpow2.f32 %v1747_v54  ;;  %v1742_v0 = vsub.f32 %v1722_v35, %v1738_v63 }
 0x5cd   : > { %v4288_v55 = vpop.eup %4287  ;;  %v1749_v1 = vmul.f32 1.442695, %v1742_v0 }
 0x5ce   : > { %v1751_v56 = vsel %vm905_vm3, %v4288_v55, 0.0 }
 0x5cf   : > { %1752 = vadd.xlane.f32.xlu0 %v1751_v56  ;;  %4293 = vpow2.f32 %v1749_v1 }
 0x5d1   : > { %v4290_v59 = vpop.eup %4289 }
 0x5d2   : > { %v1754_v60 = vsel %vm905_vm3, %v4290_v59, 0.0 }
 0x5d3   : > { %1755 = vadd.xlane.f32.xlu1 %v1754_v60 }
 0x5d5   : > { %v4292_v61 = vpop.eup %4291 }
 0x5d6   : > { %v1757_v62 = vsel %vm905_vm3, %v4292_v61, 0.0 }
 0x5d7   : > { %1758 = vadd.xlane.f32.xlu0 %v1757_v62 }
 0x5d9   : > { %v4294_v2 = vpop.eup %4293 }
 0x5da   : > { %v1760_v3 = vsel %vm905_vm3, %v4294_v2, 0.0 }
 0x5e4   : > { %1825 = vrot.lane.b32.xlu1 %v4834_v7, %s4474_s2 }
 0x5e8   : > { %1874 = vrot.lane.b32.xlu1 %v4873_v9, %s4474_s2 }
 0x5ed   : > { %1776 = vrot.lane.b32.xlu0 %v4832_v6, %s4474_s2 }
 0x5f1   : > { %2170 = vrot.lane.b32.xlu0 %v4781_v40, %s4475_s16 }
 0x5f5   : > { %2168 = vrot.lane.b32.xlu0 %v4790_v48, %s4475_s16 }
 0x5f9   : > { %2270 = vrot.lane.b32.xlu0 %v4792_v49, %s4475_s16 }
 0x5fd   : > { %2268 = vrot.lane.b32.xlu0 %v4813_v57, %s4475_s16 }
 0x60c   : > { %1761 = vadd.xlane.f32.xlu1 %v1760_v3 }
 0x61d   : > { %1923 = vrot.lane.b32.xlu1 %v4878_v16, %s4474_s2  ;;  %s5239_s2 = scalar_lea.hbm %s5321_s28, %s3694_s20 }
 0x621   : > { %2220 = vrot.lane.b32.xlu1 %v4785_v43, %s4475_s16 }
 0x625   : > { %2218 = vrot.lane.b32.xlu1 %v4801_v53, %s4475_s16 }
 0x629   : > { %2320 = vrot.lane.b32.xlu1 %v4795_v51, %s4475_s16 }
 0x62d   : > { %2318 = vrot.lane.b32.xlu1 %v4817_v58, %s4475_s16 }
 0x65c   : > { %v1753_v4 = vpop.xlane.xlu0 %1752 }
 0x65d   : > { %4295 = vrcp.f32 %v1753_v4 }
 0x660   : > { %v1756_v5 = vpop.xlane.xlu1 %1755 }
 0x661   : > { %4297 = vrcp.f32 %v1756_v5 }
 0x664   : > { %v1826_v8 = vpop.permute.xlu1 %1825  ;;  %v1759_v11 = vpop.xlane.xlu0 %1758 }
 0x665   : > { %v1831_v12 = vsel %vm1141_vm4, %v1826_v8, 0  ;;  %4299 = vrcp.f32 %v1759_v11 }
 0x666   : > { %3954 = vmatpush3.bf16.msra.mxu0 %v1831_v12 }
 0x667   : > { %v4296_v13 = vpop.eup %4295  ;;  %3965 = vmatprep.subr.bf16.mxu0 %v4472_v20 }
 0x668   : > { %v1767_v14 = vmul.f32 %v4296_v13, %v4288_v55  ;;  %v1777_v15 = vpop.permute.xlu0 %1776  ;;  %v1875_v18 = vpop.permute.xlu1 %1874  ;;  %v2122_v55 = vsel %vm1141_vm4, %v3649_v45, 0 }
 0x669   : > { %v1782_v17 = vsel %vm1141_vm4, %v1777_v15, 0  ;;  %v1880_v23 = vsel %vm1141_vm4, %v1875_v18, 0 }
 0x66a   : > { %3948 = vmatpush3.bf16.msra.mxu1 %v1782_v17  ;;  %v1771_v19 = vpack.c.bf16 %v1767_v14, %v1767_v14 }
 0x66b   : > { %v4298_v21 = vpop.eup %4297  ;;  %3959 = vmatprep.subr.bf16.mxu1 %v4472_v20 }
 0x66c   : > { %v1768_v22 = vmul.f32 %v4298_v21, %v4290_v59  ;;  %v2171_v56 = vpop.permute.xlu0 %2170 }
 0x66d   : > { %3950 = vmatmul.mubr.msk.bf16.vlgmr.msra.gmra.mrb[36].mxu1 %vm905_vm3, %v1771_v19  ;;  %v2176_v3 = vsel %vm905_vm3, %v2171_v56, 0 }
 0x66e   : > { %3960 = vmatpush3.bf16.msra.mxu1 %v1880_v23  ;;  %v1772_v24 = vpack.c.bf16 %v1768_v22, %v1768_v22  ;;  %3961 = vmatprep.mubr.msk.bf16.mxu1 %vm4473_vm2, %v4472_v20 }
 0x66f   : > { %v4300_v25 = vpop.eup %4299  ;;  %3971 = vmatprep.subr.bf16.mxu1 %v4472_v20 }
 0x670   : > { %v1769_v26 = vmul.f32 %v4300_v25, %v4292_v61  ;;  %3956 = vmatmul.mubr.msk.bf16.vlgmr.msra.gmra.mrb[40].mxu0 %vm905_vm3, %v1772_v24  ;;  %v2169_v1 = vpop.permute.xlu0 %2168 }
 0x671   : > { %3967 = vmatprep.mubr.msk.bf16.mxu0 %vm4473_vm2, %v4472_v20 }
 0x672   : > { %v1773_v28 = vpack.c.bf16 %v1769_v26, %v1769_v26 }
 0x674   : > { %v2271_v4 = vpop.permute.xlu0 %2270 }
 0x675   : > { %3962 = vmatmul.mubr.msk.bf16.vlgmr.msra.gmra.mrb[40].mxu1 %vm905_vm3, %v1773_v28  ;;  %v2276_v5 = vsel %vm905_vm3, %v2271_v4, 0 }
 0x676   : > { %3972 = vmatpush3.bf16.msra.mxu1 %v1984_v29  ;;  %3973 = vmatprep.mubr.msk.bf16.mxu1 %vm4473_vm2, %v4472_v20 }
 0x677   : > { %3983 = vmatprep.subr.bf16.mxu1 %v4472_v20 }
 0x678   : > { %v2269_v8 = vpop.permute.xlu0 %2268 }
 0x699   : > { %v1762_v30 = vpop.xlane.xlu1 %1761 }
 0x69a   : > { %4301 = vrcp.f32 %v1762_v30 }
 0x69d   : > { %v1924_v31 = vpop.permute.xlu1 %1923 }
 0x69e   : > { %v1929_v32 = vsel %vm1141_vm4, %v1924_v31, 0 }
 0x69f   : > { %3966 = vmatpush3.bf16.msra.mxu0 %v1929_v32 }
 0x6a0   : > { %3977 = vmatprep.subr.bf16.mxu0 %v4472_v20 }
 0x6a1   : > { %v2221_v11 = vpop.permute.xlu1 %2220 }
 0x6a2   : > { %v2226_v18 = vsel %vm905_vm3, %v2221_v11, 0 }
 0x6a4   : > { %v4302_v33 = vpop.eup %4301 }
 0x6a5   : > { %v1770_v34 = vmul.f32 %v4302_v33, %v4294_v2  ;;  %v2219_v15 = vpop.permute.xlu1 %2218 }
 0x6a7   : > { %v1774_v35 = vpack.c.bf16 %v1770_v34, %v1770_v34 }
 0x6a9   : > { %3968 = vmatmul.mubr.msk.bf16.vlgmr.msra.gmra.mrb[44].mxu0 %vm905_vm3, %v1774_v35  ;;  %v2321_v21 = vpop.permute.xlu1 %2320 }
 0x6aa   : > { %3979 = vmatprep.mubr.msk.bf16.mxu0 %vm4473_vm2, %v4472_v20  ;;  %3978 = vmatpush3.bf16.msra.mxu0 %v2030_v37  ;;  %v2326_v22 = vsel %vm905_vm3, %v2321_v21, 0 }
 0x6ab   : > { %3989 = vmatprep.subr.bf16.mxu0 %v4472_v20 }
 0x6ad   : > { %v2319_v23 = vpop.permute.xlu1 %2318 }
 0x740   : > { %v1818_v39 = vpop.f32.mrb[36].mxu1 }
 0x741   : > { %v1971_v41 = vpack.c.bf16 %v1818_v39, %v1818_v39  ;;  %v3951_v42 = vpop.f32.mrb[37].mxu1 }
 0x742   : > { %v1821_v46 = vpop.f32.mrb[38].mxu1 }
 0x743   : > { %v3952_v47 = vpop.f32.mrb[39].mxu1  ;;  %v1867_v50 = vpop.f32.mrb[40].mxu0  ;;  %3974 = vmatmul.mubr.msk.bf16.vlgmr.msra.gmra.mrb[20].mxu1 %vm905_vm3, %v1971_v41 }
 0x744   : > { %v1972_v52 = vpack.c.bf16 %v1867_v50, %v1867_v50  ;;  %3984 = vmatpush3.bf16.msra.mxu1 %v2076_v44  ;;  %v3957_v54 = vpop.f32.mrb[41].mxu0  ;;  %3985 = vmatprep.mubr.msk.bf16.mxu1 %vm4473_vm2, %v4472_v20 }
 0x745   : > { %v1870_v59 = vpop.f32.mrb[42].mxu0  ;;  %3995 = vmatprep.subr.bf16.mxu1 %v4472_v20 }
 0x746   : > { %v3958_v60 = vpop.f32.mrb[43].mxu0  ;;  %3980 = vmatmul.mubr.msk.bf16.vlgmr.msra.gmra.mrb[24].mxu0 %vm905_vm3, %v1972_v52 }
 0x747   : > { %3990 = vmatpush3.bf16.msra.mxu0 %v2122_v55  ;;  %3991 = vmatprep.mubr.msk.bf16.mxu0 %vm4473_vm2, %v4472_v20 }
 0x748   : > { %v1916_v61 = vpop.f32.mrb[40].mxu1  ;;  %4001 = vmatprep.subr.bf16.mxu0 %v4472_v20 }
 0x749   : > { %v1973_v62 = vpack.c.bf16 %v1916_v61, %v1916_v61  ;;  %v3963_v63 = vpop.f32.mrb[41].mxu1 }
 0x74a   : > { %v1919_v0 = vpop.f32.mrb[42].mxu1 }
 0x74b   : > { %v3964_v2 = vpop.f32.mrb[43].mxu1  ;;  %3986 = vmatmul.mubr.msk.bf16.vlgmr.msra.gmra.mrb[24].mxu1 %vm905_vm3, %v1973_v62 }
 0x74c   : > { %3997 = vmatprep.mubr.msk.bf16.mxu1 %vm4473_vm2, %v4472_v20 }
 0x74d   : > { %3996 = vmatpush3.bf16.xpose.msra.mxu1 %v2176_v3 }
 0x74e   : > { %4007 = vmatprep.subr.bf16.mxu1 %v4472_v20 }
 0x754   : > { %3998 = vmatmul.mubr.msk.bf16.vlgmr.msra.gmra.mrb[44].mxu1 %vm905_vm3, %v2169_v1 }
 0x755   : > { %4008 = vmatpush3.bf16.xpose.msra.mxu1 %v2276_v5  ;;  %4009 = vmatprep.mubr.msk.bf16.mxu1 %vm4473_vm2, %v4472_v20 }
 0x756   : > { %4019 = vmatprep.subr.bf16.mxu1 %v4472_v20 }
 0x75c   : > { %4010 = vmatmul.mubr.msk.bf16.vlgmr.msra.gmra.mrb[48].mxu1 %vm905_vm3, %v2269_v8 }
 0x75d   : > { %4021 = vmatprep.mubr.msk.bf16.mxu1 %vm4473_vm2, %v4472_v20 }
 0x77c   : > { %v1965_v12 = vpop.f32.mrb[44].mxu0 }
 0x77d   : > { %v1974_v13 = vpack.c.bf16 %v1965_v12, %v1965_v12  ;;  %v3969_v14 = vpop.f32.mrb[45].mxu0 }
 0x77e   : > { %v1968_v17 = vpop.f32.mrb[46].mxu0 }
 0x77f   : > { %v3970_v19 = vpop.f32.mrb[47].mxu0  ;;  %3992 = vmatmul.mubr.msk.bf16.vlgmr.msra.gmra.mrb[28].mxu0 %vm905_vm3, %v1974_v13 }
 0x780   : > { %4002 = vmatpush3.bf16.xpose.msra.mxu0 %v2226_v18  ;;  %4003 = vmatprep.mubr.msk.bf16.mxu0 %vm4473_vm2, %v4472_v20 }
 0x781   : > { %4013 = vmatprep.subr.bf16.mxu0 %v4472_v20 }
 0x787   : > { %4004 = vmatmul.mubr.msk.bf16.vlgmr.msra.gmra.mrb[48].mxu0 %vm905_vm3, %v2219_v15 }
 0x788   : > { %4014 = vmatpush3.bf16.xpose.msra.mxu0 %v2326_v22  ;;  %4015 = vmatprep.mubr.msk.bf16.mxu0 %vm4473_vm2, %v4472_v20 }
 0x789   : > { %4025 = vmatprep.subr.bf16.mxu0 %v4472_v20 }
 0x78f   : > { %4016 = vmatmul.mubr.msk.bf16.vlgmr.msra.gmra.mrb[52].mxu0 %vm905_vm3, %v2319_v23 }
 0x790   : > { %4027 = vmatprep.mubr.msk.bf16.mxu0 %vm4473_vm2, %v4472_v20 }
 0x827   : > { %v2212_v24 = vpop.f32.mrb[44].mxu1 }
 0x828   : > { %v2213_v25 = vadd.f32 %v2212_v24, %v4843_v10  ;;  %v3999_v26 = vpop.f32.mrb[45].mxu1 }
 0x829   : > { %v2215_v27 = vpop.f32.mrb[46].mxu1 }
 0x82a   : > { %v4000_v28 = vpop.f32.mrb[47].mxu1  ;;  %v2368_v29 = vsel %vm905_vm3, %v2213_v25, -inf  ;;  %v3662_v27 = vld [vmem:[%s5294_s10 + $0x20] sm:$0xf] }
 0x82b   : > { %2369 = vmax.xlane.f32.xlu0 %v2368_v29  ;;  %v2621_v28 = vsel %vm1141_vm4, %v3662_v27, 0 }
 0x82f   : > { %v2312_v30 = vpop.f32.mrb[48].mxu1 }
 0x830   : > { %v2313_v31 = vadd.f32 %v2312_v30, %v4843_v10  ;;  %v4011_v32 = vpop.f32.mrb[49].mxu1 }
 0x831   : > { %v2315_v33 = vpop.f32.mrb[50].mxu1 }
 0x832   : > { %v4012_v34 = vpop.f32.mrb[51].mxu1  ;;  %v2374_v35 = vsel %vm905_vm3, %v2313_v31, -inf }
 0x833   : > { %2375 = vmax.xlane.f32.xlu0 %v2374_v35  ;;  %v3663_v35 = vld [vmem:[%s5294_s10 + $0x24] sm:$0xf] }
 0x85a   : > { %v2262_v36 = vpop.f32.mrb[48].mxu0 }
 0x85b   : > { %v2263_v37 = vadd.f32 %v2262_v36, %v4843_v10  ;;  %v4005_v38 = vpop.f32.mrb[49].mxu0  ;;  %v2667_v36 = vsel %vm1141_vm4, %v3663_v35, 0 }
 0x85c   : > { %v2265_v39 = vpop.f32.mrb[50].mxu0 }
 0x85d   : > { %v4006_v41 = vpop.f32.mrb[51].mxu0  ;;  %v2371_v42 = vsel %vm905_vm3, %v2263_v37, -inf }
 0x85e   : > { %2372 = vmax.xlane.f32.xlu1 %v2371_v42 }
 0x862   : > { %v2362_v44 = vpop.f32.mrb[52].mxu0 }
 0x863   : > { %v2363_v45 = vadd.f32 %v2362_v44, %v4843_v10  ;;  %v4017_v46 = vpop.f32.mrb[53].mxu0 }
 0x864   : > { %v2365_v47 = vpop.f32.mrb[54].mxu0 }
 0x865   : > { %v4018_v50 = vpop.f32.mrb[55].mxu0  ;;  %v2377_v52 = vsel %vm905_vm3, %v2363_v45, -inf }
 0x866   : > { %2378 = vmax.xlane.f32.xlu0 %v2377_v52 }
 0x8b8   : > { %v2370_v54 = vpop.xlane.xlu0 %2369 }
 0x8b9   : > { %v2380_v55 = vsub.f32 %v2213_v25, %v2370_v54  ;;  %v3665_v54 = vld [vmem:[%s5294_s10 + $0x2c] sm:$0xf] }
 0x8bb   : > { %v2384_v56 = vmul.f32 1.442695, %v2380_v55 }
 0x8bd   : > { %4303 = vpow2.f32 %v2384_v56 }
 0x8c0   : > { %v2376_v59 = vpop.xlane.xlu0 %2375 }
 0x8c1   : > { %v2382_v60 = vsub.f32 %v2313_v31, %v2376_v59 }
 0x8c3   : > { %v2388_v61 = vmul.f32 1.442695, %v2382_v60 }
 0x8c5   : > { %4305 = vpow2.f32 %v2388_v61 }
 0x8c7   : > { %v4304_v62 = vpop.eup %4303 }
 0x8c8   : > { %v2392_v63 = vsel %vm905_vm3, %v4304_v62, 0.0 }
 0x8c9   : > { %2393 = vadd.xlane.f32.xlu0 %v2392_v63 }
 0x8cf   : > { %v4306_v0 = vpop.eup %4305 }
 0x8d0   : > { %v2398_v10 = vsel %vm905_vm3, %v4306_v0, 0.0 }
 0x8d1   : > { %2399 = vadd.xlane.f32.xlu0 %v2398_v10 }
 0x8e7   : > { %2416 = vrot.lane.b32.xlu0 %v4832_v6, %s4475_s16 }
 0x8eb   : > { %2807 = vrot.lane.b32.xlu0 %v4781_v40, %s4476_s19  ;;  %v2373_v1 = vpop.xlane.xlu1 %2372 }
 0x8ec   : > { %v2381_v2 = vsub.f32 %v2263_v37, %v2373_v1  ;;  %v3664_v37 = vld [vmem:[%s5294_s10 + $0x28] sm:$0xf] }
 0x8ed   : > { %v2713_v42 = vsel %vm1141_vm4, %v3664_v37, 0 }
 0x8ee   : > { %v2386_v3 = vmul.f32 1.442695, %v2381_v2 }
 0x8ef   : > { %2805 = vrot.lane.b32.xlu0 %v4790_v48, %s4476_s19 }
 0x8f0   : > { %4307 = vpow2.f32 %v2386_v3 }
 0x8f3   : > { %2907 = vrot.lane.b32.xlu0 %v4792_v49, %s4476_s19  ;;  %v2379_v40 = vpop.xlane.xlu0 %2378 }
 0x8f4   : > { %v2383_v8 = vsub.f32 %v2363_v45, %v2379_v40 }
 0x8f6   : > { %v2390_v48 = vmul.f32 1.442695, %v2383_v8 }
 0x8f7   : > { %2905 = vrot.lane.b32.xlu0 %v4813_v57, %s4476_s19 }
 0x8f8   : > { %4309 = vpow2.f32 %v2390_v48 }
 0x8fa   : > { %v4308_v4 = vpop.eup %4307 }
 0x8fb   : > { %v2395_v5 = vsel %vm905_vm3, %v4308_v4, 0.0 }
 0x8fc   : > { %2396 = vadd.xlane.f32.xlu1 %v2395_v5 }
 0x902   : > { %v4310_v11 = vpop.eup %4309 }
 0x903   : > { %v2401_v49 = vsel %vm905_vm3, %v4310_v11, 0.0 }
 0x90d   : > { %2464 = vrot.lane.b32.xlu1 %v4834_v7, %s4475_s16 }
 0x911   : > { %2512 = vrot.lane.b32.xlu1 %v4873_v9, %s4475_s16 }
 0x935   : > { %2402 = vadd.xlane.f32.xlu1 %v2401_v49 }
 0x946   : > { %2560 = vrot.lane.b32.xlu1 %v4878_v16, %s4475_s16  ;;  %s498_s16 = scalar_lea.vmem [#allocation10], %s3591_s26 }
 0x947   : > { %s3460_s13 = sshll.u32 %s498_s16, 4  ;;  %s5234_s13 = int_to_ptr.vmem [resolvable:$true] %s3460_s13 }
 0x948   : > { %s4396_s12 = scalar_lea.vmem %s5234_s13, 512  ;;  %p4403_p7 = scmp.lt.s32.totalorder %s5234_s13, %s4401_s14 }
 0x949   : > { %p4397_p1 = scmp.ne.s32.totalorder %s5234_s13, %s4396_s12 }
 0x94a   : > { %2857 = vrot.lane.b32.xlu1 %v4785_v43, %s4476_s19 }
 0x94b   : > { %p4398_p4 = pnand %p4397_p1, %p5322_p11 }
 0x94d   : > { %p4399_p5 = pneg %p4398_p4 }
 0x94e   : > { %2855 = vrot.lane.b32.xlu1 %v4801_v53, %s4476_s19 }
 0x952   : > { %2957 = vrot.lane.b32.xlu1 %v4795_v51, %s4476_s19 }
 0x956   : > { %v2394_v57 = vpop.xlane.xlu0 %2393  ;;  %2955 = vrot.lane.b32.xlu1 %v4817_v58, %s4476_s19 }
 0x957   : > { %4311 = vrcp.f32 %v2394_v57 }
 0x95e   : > { %v2400_v12 = vpop.xlane.xlu0 %2399 }
 0x95f   : > { %4313 = vrcp.f32 %v2400_v12 }
 0x961   : > { %v4312_v13 = vpop.eup %4311 }
 0x962   : > { %v2408_v14 = vmul.f32 %v4312_v13, %v4304_v62  ;;  %v2417_v15 = vpop.permute.xlu0 %2416 }
 0x963   : > { %v2422_v17 = vsel %vm1141_vm4, %v2417_v15, 0 }
 0x964   : > { %4020 = vmatpush3.bf16.msra.mxu1 %v2422_v17  ;;  %v2412_v18 = vpack.c.bf16 %v2408_v14, %v2408_v14 }
 0x965   : > { %4031 = vmatprep.subr.bf16.mxu1 %v4472_v20 }
 0x966   : > { %v2808_v46 = vpop.permute.xlu0 %2807 }
 0x967   : > { %4022 = vmatmul.mubr.msk.bf16.vlgmr.msra.gmra.mrb[52].mxu1 %vm905_vm3, %v2412_v18  ;;  %v2813_v59 = vsel %vm905_vm3, %v2808_v46, 0  ;;  %v4335_v18 = vld [vmem:[%s4697_s29] sm:$0xff] }
 0x968   : > { %4033 = vmatprep.mubr.msk.bf16.mxu1 %vm4473_vm2, %v4472_v20 }
 0x969   : > { %v4314_v51 = vpop.eup %4313 }
 0x96a   : > { %v2410_v19 = vmul.f32 %v4314_v51, %v4306_v0  ;;  %v2806_v55 = vpop.permute.xlu0 %2805  ;;  %v2759_v0 = vsel %vm1141_vm4, %v3665_v54, 0 }
 0x96c   : > { %v2414_v24 = vpack.c.bf16 %v2410_v19, %v2410_v19 }
 0x96e   : > { %v2908_v2 = vpop.permute.xlu0 %2907 }
 0x96f   : > { %v2913_v3 = vsel %vm905_vm3, %v2908_v2, 0 }
 0x989   : > { %v2397_v43 = vpop.xlane.xlu1 %2396 }
 0x98a   : > { %4315 = vrcp.f32 %v2397_v43 }
 0x98d   : > { %v2465_v53 = vpop.permute.xlu1 %2464 }
 0x98e   : > { %v2470_v58 = vsel %vm1141_vm4, %v2465_v53, 0 }
 0x98f   : > { %4026 = vmatpush3.bf16.msra.mxu0 %v2470_v58 }
 0x990   : > { %4037 = vmatprep.subr.bf16.mxu0 %v4472_v20 }
 0x991   : > { %v2513_v21 = vpop.permute.xlu1 %2512 }
 0x992   : > { %v2518_v22 = vsel %vm1141_vm4, %v2513_v21, 0 }
 0x993   : > { %4032 = vmatpush3.bf16.msra.mxu1 %v2518_v22 }
 0x994   : > { %v4316_v23 = vpop.eup %4315  ;;  %4043 = vmatprep.subr.bf16.mxu1 %v4472_v20 }
 0x995   : > { %v2409_v25 = vmul.f32 %v4316_v23, %v4308_v4  ;;  %v2906_v4 = vpop.permute.xlu0 %2905 }
 0x996   : > { %4034 = vmatmul.mubr.msk.bf16.vlgmr.msra.gmra.mrb[56].mxu1 %vm905_vm3, %v2414_v24 }
 0x997   : > { %v2413_v26 = vpack.c.bf16 %v2409_v25, %v2409_v25  ;;  %4045 = vmatprep.mubr.msk.bf16.mxu1 %vm4473_vm2, %v4472_v20  ;;  %4044 = vmatpush3.bf16.msra.mxu1 %v2621_v28 }
 0x998   : > { %4055 = vmatprep.subr.bf16.mxu1 %v4472_v20 }
 0x999   : > { %4028 = vmatmul.mubr.msk.bf16.vlgmr.msra.gmra.mrb[56].mxu0 %vm905_vm3, %v2413_v26 }
 0x99a   : > { %4039 = vmatprep.mubr.msk.bf16.mxu0 %vm4473_vm2, %v4472_v20 }
 0x9c2   : > { %v2403_v29 = vpop.xlane.xlu1 %2402 }
 0x9c3   : > { %4317 = vrcp.f32 %v2403_v29 }
 0x9c6   : > { %v2561_v30 = vpop.permute.xlu1 %2560 }
 0x9c7   : > { %v2566_v31 = vsel %vm1141_vm4, %v2561_v30, 0 }
 0x9c8   : > { %4038 = vmatpush3.bf16.msra.mxu0 %v2566_v31 }
 0x9c9   : > { %4049 = vmatprep.subr.bf16.mxu0 %v4472_v20 }
 0x9ca   : > { %v2858_v5 = vpop.permute.xlu1 %2857 }
 0x9cb   : > { %v2863_v57 = vsel %vm905_vm3, %v2858_v5, 0 }
 0x9cd   : > { %v4318_v32 = vpop.eup %4317 }
 0x9ce   : > { %v2411_v33 = vmul.f32 %v4318_v32, %v4310_v11  ;;  %v2856_v11 = vpop.permute.xlu1 %2855 }
 0x9d0   : > { %v2415_v34 = vpack.c.bf16 %v2411_v33, %v2411_v33 }
 0x9d2   : > { %4040 = vmatmul.mubr.msk.bf16.vlgmr.msra.gmra.mrb[60].mxu0 %vm905_vm3, %v2415_v34  ;;  %v2958_v13 = vpop.permute.xlu1 %2957 }
 0x9d3   : > { %4051 = vmatprep.mubr.msk.bf16.mxu0 %vm4473_vm2, %v4472_v20  ;;  %4050 = vmatpush3.bf16.msra.mxu0 %v2667_v36  ;;  %v2963_v14 = vsel %vm905_vm3, %v2958_v13, 0 }
 0x9d4   : > { %4061 = vmatprep.subr.bf16.mxu0 %v4472_v20 }
 0x9d6   : > { %v2956_v15 = vpop.permute.xlu1 %2955 }
 0xa3a   : > { %v2458_v38 = vpop.f32.mrb[52].mxu1 }
 0xa3b   : > { %v2608_v39 = vpack.c.bf16 %v2458_v38, %v2458_v38  ;;  %v4023_v41 = vpop.f32.mrb[53].mxu1 }
 0xa3c   : > { %v2461_v44 = vpop.f32.mrb[54].mxu1 }
 0xa3d   : > { %v4024_v45 = vpop.f32.mrb[55].mxu1  ;;  %4046 = vmatmul.mubr.msk.bf16.vlgmr.msra.gmra.mrb[20].mxu1 %vm905_vm3, %v2608_v39 }
 0xa3e   : > { %4056 = vmatpush3.bf16.msra.mxu1 %v2713_v42  ;;  %4057 = vmatprep.mubr.msk.bf16.mxu1 %vm4473_vm2, %v4472_v20 }
 0xa3f   : > { %4067 = vmatprep.subr.bf16.mxu1 %v4472_v20 }
 0xa69   : > { %v2554_v47 = vpop.f32.mrb[56].mxu1 }
 0xa6a   : > { %v2610_v50 = vpack.c.bf16 %v2554_v47, %v2554_v47  ;;  %v4035_v52 = vpop.f32.mrb[57].mxu1 }
 0xa6b   : > { %v2557_v56 = vpop.f32.mrb[58].mxu1 }
 0xa6c   : > { %v2506_v60 = vpop.f32.mrb[56].mxu0  ;;  %v4036_v61 = vpop.f32.mrb[59].mxu1  ;;  %4058 = vmatmul.mubr.msk.bf16.vlgmr.msra.gmra.mrb[24].mxu1 %vm905_vm3, %v2610_v50 }
 0xa6d   : > { %v2609_v62 = vpack.c.bf16 %v2506_v60, %v2506_v60  ;;  %4068 = vmatpush3.bf16.xpose.msra.mxu1 %v2813_v59  ;;  %v4029_v63 = vpop.f32.mrb[57].mxu0  ;;  %4069 = vmatprep.mubr.msk.bf16.mxu1 %vm4473_vm2, %v4472_v20 }
 0xa6e   : > { %v2509_v10 = vpop.f32.mrb[58].mxu0  ;;  %4079 = vmatprep.subr.bf16.mxu1 %v4472_v20 }
 0xa6f   : > { %v4030_v1 = vpop.f32.mrb[59].mxu0  ;;  %4052 = vmatmul.mubr.msk.bf16.vlgmr.msra.gmra.mrb[24].mxu0 %vm905_vm3, %v2609_v62 }
 0xa70   : > { %4062 = vmatpush3.bf16.msra.mxu0 %v2759_v0  ;;  %4063 = vmatprep.mubr.msk.bf16.mxu0 %vm4473_vm2, %v4472_v20 }
 0xa71   : > { %4073 = vmatprep.subr.bf16.mxu0 %v4472_v20 }
 0xa74   : > { %4070 = vmatmul.mubr.msk.bf16.vlgmr.msra.gmra.mrb[60].mxu1 %vm905_vm3, %v2806_v55 }
 0xa75   : > { %4080 = vmatpush3.bf16.xpose.msra.mxu1 %v2913_v3  ;;  %4081 = vmatprep.mubr.msk.bf16.mxu1 %vm4473_vm2, %v4472_v20 }
 0xa76   : > { %4091 = vmatprep.subr.bf16.mxu1 %v4472_v20 }
 0xa7c   : > { %4082 = vmatmul.mubr.msk.bf16.vlgmr.msra.gmra.mrb[64].mxu1 %vm905_vm3, %v2906_v4 }
 0xa7d   : > { %4093 = vmatprep.mubr.msk.bf16.mxu1 %vm4473_vm2, %v4472_v20 }
 0xaa5   : > { %v2602_v40 = vpop.f32.mrb[60].mxu0 }
 0xaa6   : > { %v2611_v8 = vpack.c.bf16 %v2602_v40, %v2602_v40  ;;  %v4041_v48 = vpop.f32.mrb[61].mxu0 }
 0xaa7   : > { %v2605_v49 = vpop.f32.mrb[62].mxu0 }
 0xaa8   : > { %v4042_v12 = vpop.f32.mrb[63].mxu0  ;;  %4064 = vmatmul.mubr.msk.bf16.vlgmr.msra.gmra.mrb[28].mxu0 %vm905_vm3, %v2611_v8 }
 0xaa9   : > { %4074 = vmatpush3.bf16.xpose.msra.mxu0 %v2863_v57  ;;  %4075 = vmatprep.mubr.msk.bf16.mxu0 %vm4473_vm2, %v4472_v20 }
 0xaaa   : > { %4085 = vmatprep.subr.bf16.mxu0 %v4472_v20 }
 0xab0   : > { %4076 = vmatmul.mubr.msk.bf16.vlgmr.msra.gmra.mrb[64].mxu0 %vm905_vm3, %v2856_v11 }
 0xab1   : > { %4086 = vmatpush3.bf16.xpose.msra.mxu0 %v2963_v14  ;;  %4087 = vmatprep.mubr.msk.bf16.mxu0 %vm4473_vm2, %v4472_v20 }
 0xab2   : > { %4097 = vmatprep.subr.bf16.mxu0 %v4472_v20 }
 0xab8   : > { %4088 = vmatmul.mubr.msk.bf16.vlgmr.msra.gmra.mrb[68].mxu0 %vm905_vm3, %v2956_v15 }
 0xab9   : > { %4099 = vmatprep.mubr.msk.bf16.mxu0 %vm4473_vm2, %v4472_v20 }
 0xb47   : > { %v2849_v17 = vpop.f32.mrb[60].mxu1 }
 0xb48   : > { %v2850_v43 = vadd.f32 %v4335_v18, %v2849_v17  ;;  %v4071_v51 = vpop.f32.mrb[61].mxu1  ;;  %v3678_v17 = vld [vmem:[%s5294_s10 + $0x30] sm:$0xf] }
 0xb49   : > { %v2852_v53 = vpop.f32.mrb[62].mxu1 }
 0xb4a   : > { %v4072_v58 = vpop.f32.mrb[63].mxu1  ;;  %v3005_v19 = vsel %vm905_vm3, %v2850_v43, -inf }
 0xb4b   : > { %3006 = vmax.xlane.f32.xlu0 %v3005_v19 }
 0xb4f   : > { %v2949_v21 = vpop.f32.mrb[64].mxu1 }
 0xb50   : > { %v2950_v22 = vadd.f32 %v4335_v18, %v2949_v21  ;;  %v4083_v23 = vpop.f32.mrb[65].mxu1 }
 0xb51   : > { %v2952_v24 = vpop.f32.mrb[66].mxu1 }
 0xb52   : > { %v4084_v25 = vpop.f32.mrb[67].mxu1  ;;  %v3011_v26 = vsel %vm905_vm3, %v2950_v22, -inf  ;;  %v3680_v24 = vld [vmem:[%s5294_s10 + $0x38] sm:$0xf] }
 0xb53   : > { %3012 = vmax.xlane.f32.xlu0 %v3011_v26 }
 0xb83   : > { %v2899_v27 = vpop.f32.mrb[64].mxu0 }
 0xb84   : > { %v2900_v28 = vadd.f32 %v4335_v18, %v2899_v27  ;;  %v4077_v29 = vpop.f32.mrb[65].mxu0 }
 0xb85   : > { %v2902_v30 = vpop.f32.mrb[66].mxu0 }
 0xb86   : > { %v4078_v31 = vpop.f32.mrb[67].mxu0  ;;  %v3008_v32 = vsel %vm905_vm3, %v2900_v28, -inf }
 0xb87   : > { %3009 = vmax.xlane.f32.xlu1 %v3008_v32 }
 0xb8b   : > { %v2999_v33 = vpop.f32.mrb[68].mxu0 }
 0xb8c   : > { %v3000_v34 = vadd.f32 %v4335_v18, %v2999_v33  ;;  %v4089_v35 = vpop.f32.mrb[69].mxu0  ;;  %v3258_v18 = vsel %vm1141_vm4, %v3678_v17, 0 }
 0xb8d   : > { %v3002_v36 = vpop.f32.mrb[70].mxu0 }
 0xb8e   : > { %v4090_v37 = vpop.f32.mrb[71].mxu0  ;;  %v3014_v38 = vsel %vm905_vm3, %v3000_v34, -inf }
 0xb8f   : > { %3015 = vmax.xlane.f32.xlu0 %v3014_v38 }
 0xbd8   : > { %v3007_v39 = vpop.xlane.xlu0 %3006 }
 0xbd9   : > { %v3017_v41 = vsub.f32 %v2850_v43, %v3007_v39 }
 0xbdb   : > { %v3021_v42 = vmul.f32 1.442695, %v3017_v41 }
 0xbdd   : > { %4319 = vpow2.f32 %v3021_v42 }
 0xbe0   : > { %v3013_v44 = vpop.xlane.xlu0 %3012 }
 0xbe1   : > { %v3019_v45 = vsub.f32 %v2950_v22, %v3013_v44  ;;  %v3679_v22 = vld [vmem:[%s5294_s10 + $0x34] sm:$0xf] }
 0xbe2   : > { %v3304_v23 = vsel %vm1141_vm4, %v3679_v22, 0 }
 0xbe3   : > { %v3025_v46 = vmul.f32 1.442695, %v3019_v45 }
 0xbe5   : > { %4321 = vpow2.f32 %v3025_v46 }
 0xbe7   : > { %v4320_v47 = vpop.eup %4319 }
 0xbe8   : > { %v3029_v50 = vsel %vm905_vm3, %v4320_v47, 0.0 }
 0xbe9   : > { %3030 = vadd.xlane.f32.xlu0 %v3029_v50 }
 0xbef   : > { %v4322_v52 = vpop.eup %4321 }
 0xbf0   : > { %v3035_v54 = vsel %vm905_vm3, %v4322_v52, 0.0 }
 0xbf1   : > { %3036 = vadd.xlane.f32.xlu0 %v3035_v54  ;;  %v3625_v54 = vld [vmem:[%s5295_s11] ss:$0 sm:$0xff] }
 0xc07   : > { %3053 = vrot.lane.b32.xlu0 %v4832_v6, %s4476_s19 }
 0xc14   : > { %v3010_v55 = vpop.xlane.xlu1 %3009 }
 0xc15   : > { %v3018_v56 = vsub.f32 %v2900_v28, %v3010_v55  ;;  %v3350_v28 = vsel %vm1141_vm4, %v3680_v24, 0 }
 0xc17   : > { %v3023_v59 = vmul.f32 1.442695, %v3018_v56 }
 0xc19   : > { %4323 = vpow2.f32 %v3023_v59 }
 0xc1c   : > { %v3016_v62 = vpop.xlane.xlu0 %3015 }
 0xc1d   : > { %v3020_v63 = vsub.f32 %v3000_v34, %v3016_v62  ;;  %v3681_v34 = vld [vmem:[%s5294_s10 + $0x3c] sm:$0xf] }
 0xc1e   : > { %v3396_v41 = vsel %vm1141_vm4, %v3681_v34, 0 }
 0xc1f   : > { %v3027_v0 = vmul.f32 1.442695, %v3020_v63 }
 0xc21   : > { %4325 = vpow2.f32 %v3027_v0 }
 0xc23   : > { %v4324_v60 = vpop.eup %4323 }
 0xc24   : > { %v3032_v61 = vsel %vm905_vm3, %v4324_v60, 0.0 }
 0xc25   : > { %3033 = vadd.xlane.f32.xlu1 %v3032_v61 }
 0xc2b   : > { %v4326_v10 = vpop.eup %4325 }
 0xc2c   : > { %v3038_v6 = vsel %vm905_vm3, %v4326_v10, 0.0 }
 0xc36   : > { %3101 = vrot.lane.b32.xlu1 %v4834_v7, %s4476_s19 }
 0xc3a   : > { %3149 = vrot.lane.b32.xlu1 %v4873_v9, %s4476_s19 }
 0xc5e   : > { %3039 = vadd.xlane.f32.xlu1 %v3038_v6 }
 0xc6f   : > { %3197 = vrot.lane.b32.xlu1 %v4878_v16, %s4476_s19  ;;  %s4402_s19 = scalar_lea.vmem %s4401_s14, 1024 }
 0xc70   : > { %p4404_p9 = scmp.lt.s32.totalorder %s4402_s19, %s4396_s12 }
 0xc72   : > { %p4405_p3 = por %p4404_p9, %p4403_p7 }
 0xc74   : > { %p4406_p12 = pnand %p4405_p3, %p4399_p5 }
 0xc76   : > { %v3031_v1 = vpop.xlane.xlu0 %3030 }
 0xc77   : > { %4327 = vrcp.f32 %v3031_v1 }
 0xc7e   : > { %v3037_v2 = vpop.xlane.xlu0 %3036 }
 0xc7f   : > { %4329 = vrcp.f32 %v3037_v2 }
 0xc81   : > { %v4328_v3 = vpop.eup %4327 }
 0xc82   : > { %v3045_v4 = vmul.f32 %v4328_v3, %v4320_v47  ;;  %v3054_v7 = vpop.permute.xlu0 %3053 }
 0xc83   : > { %v3059_v5 = vsel %vm1141_vm4, %v3054_v7, 0 }
 0xc84   : > { %4092 = vmatpush3.bf16.msra.mxu1 %v3059_v5  ;;  %v3049_v9 = vpack.c.bf16 %v3045_v4, %v3045_v4 }
 0xc85   : > { %4103 = vmatprep.subr.bf16.mxu1 %v4472_v20 }
 0xc87   : > { %4094 = vmatmul.mubr.msk.bf16.vlgmr.msra.gmra.mrb[68].mxu1 %vm905_vm3, %v3049_v9 }
 0xc88   : > { %4105 = vmatprep.mubr.msk.bf16.mxu1 %vm4473_vm2, %v4472_v20 }
 0xc89   : > { %v4330_v16 = vpop.eup %4329 }
 0xc8a   : > { %v3047_v11 = vmul.f32 %v4330_v16, %v4322_v52 }
 0xc8c   : > { %v3051_v13 = vpack.c.bf16 %v3047_v11, %v3047_v11 }
 0xcb2   : > { %v3034_v40 = vpop.xlane.xlu1 %3033 }
 0xcb3   : > { %4331 = vrcp.f32 %v3034_v40 }
 0xcb6   : > { %v3102_v8 = vpop.permute.xlu1 %3101 }
 0xcb7   : > { %v3107_v48 = vsel %vm1141_vm4, %v3102_v8, 0 }
 0xcb8   : > { %4098 = vmatpush3.bf16.msra.mxu0 %v3107_v48 }
 0xcb9   : > { %4109 = vmatprep.subr.bf16.mxu0 %v4472_v20 }
 0xcba   : > { %v3150_v49 = vpop.permute.xlu1 %3149 }
 0xcbb   : > { %v3155_v57 = vsel %vm1141_vm4, %v3150_v49, 0 }
 0xcbc   : > { %4104 = vmatpush3.bf16.msra.mxu1 %v3155_v57 }
 0xcbd   : > { %v4332_v12 = vpop.eup %4331  ;;  %4115 = vmatprep.subr.bf16.mxu1 %v4472_v20 }
 0xcbe   : > { %v3046_v14 = vmul.f32 %v4332_v12, %v4324_v60 }
 0xcbf   : > { %4106 = vmatmul.mubr.msk.bf16.vlgmr.msra.gmra.mrb[72].mxu1 %vm905_vm3, %v3051_v13 }
 0xcc0   : > { %v3050_v15 = vpack.c.bf16 %v3046_v14, %v3046_v14  ;;  %4117 = vmatprep.mubr.msk.bf16.mxu1 %vm4473_vm2, %v4472_v20  ;;  %4116 = vmatpush3.bf16.msra.mxu1 %v3258_v18 }
 0xcc1   : > { %4127 = vmatprep.subr.bf16.mxu1 %v4472_v20 }
 0xcc2   : > { %4100 = vmatmul.mubr.msk.bf16.vlgmr.msra.gmra.mrb[72].mxu0 %vm905_vm3, %v3050_v15 }
 0xcc3   : > { %4111 = vmatprep.mubr.msk.bf16.mxu0 %vm4473_vm2, %v4472_v20 }
 0xceb   : > { %v3040_v43 = vpop.xlane.xlu1 %3039 }
 0xcec   : > { %4333 = vrcp.f32 %v3040_v43 }
 0xcef   : > { %v3198_v51 = vpop.permute.xlu1 %3197 }
 0xcf0   : > { %v3203_v53 = vsel %vm1141_vm4, %v3198_v51, 0 }
 0xcf1   : > { %4110 = vmatpush3.bf16.msra.mxu0 %v3203_v53 }
 0xcf2   : > { %4121 = vmatprep.subr.bf16.mxu0 %v4472_v20 }
 0xcf6   : > { %v4334_v58 = vpop.eup %4333 }
 0xcf7   : > { %v3048_v19 = vmul.f32 %v4334_v58, %v4326_v10 }
 0xcf9   : > { %v3052_v21 = vpack.c.bf16 %v3048_v19, %v3048_v19 }
 0xcfb   : > { %4112 = vmatmul.mubr.msk.bf16.vlgmr.msra.gmra.mrb[76].mxu0 %vm905_vm3, %v3052_v21 }
 0xcfc   : > { %4123 = vmatprep.mubr.msk.bf16.mxu0 %vm4473_vm2, %v4472_v20  ;;  %4122 = vmatpush3.bf16.msra.mxu0 %v3304_v23 }
 0xcfd   : > { %4133 = vmatprep.subr.bf16.mxu0 %v4472_v20 }
 0xd5a   : > { %v3095_v25 = vpop.f32.mrb[68].mxu1 }
 0xd5b   : > { %v3245_v26 = vpack.c.bf16 %v3095_v25, %v3095_v25  ;;  %v4095_v27 = vpop.f32.mrb[69].mxu1 }
 0xd5c   : > { %v3098_v29 = vpop.f32.mrb[70].mxu1 }
 0xd5d   : > { %v4096_v30 = vpop.f32.mrb[71].mxu1  ;;  %4118 = vmatmul.mubr.msk.bf16.vlgmr.msra.gmra.mrb[20].mxu1 %vm905_vm3, %v3245_v26 }
 0xd5e   : > { %4128 = vmatpush3.bf16.msra.mxu1 %v3350_v28  ;;  %4129 = vmatprep.mubr.msk.bf16.mxu1 %vm4473_vm2, %v4472_v20 }
 0xd92   : > { %v3191_v31 = vpop.f32.mrb[72].mxu1 }
 0xd93   : > { %v3247_v32 = vpack.c.bf16 %v3191_v31, %v3191_v31  ;;  %v4107_v33 = vpop.f32.mrb[73].mxu1 }
 0xd94   : > { %v3194_v35 = vpop.f32.mrb[74].mxu1 }
 0xd95   : > { %v3143_v36 = vpop.f32.mrb[72].mxu0  ;;  %v4108_v37 = vpop.f32.mrb[75].mxu1  ;;  %4130 = vmatmul.mubr.msk.bf16.vlgmr.msra.gmra.mrb[24].mxu1 %vm905_vm3, %v3247_v32 }
 0xd96   : > { %v3246_v38 = vpack.c.bf16 %v3143_v36, %v3143_v36  ;;  %v4101_v39 = vpop.f32.mrb[73].mxu0 }
 0xd97   : > { %v3146_v42 = vpop.f32.mrb[74].mxu0 }
 0xd98   : > { %v4102_v44 = vpop.f32.mrb[75].mxu0  ;;  %4124 = vmatmul.mubr.msk.bf16.vlgmr.msra.gmra.mrb[24].mxu0 %vm905_vm3, %v3246_v38 }
 0xd99   : > { %4134 = vmatpush3.bf16.msra.mxu0 %v3396_v41  ;;  %4135 = vmatprep.mubr.msk.bf16.mxu0 %vm4473_vm2, %v4472_v20 }
 0xdce   : > { %v3239_v45 = vpop.f32.mrb[76].mxu0 }
 0xdcf   : > { %v3248_v46 = vpack.c.bf16 %v3239_v45, %v3239_v45  ;;  %v4113_v47 = vpop.f32.mrb[77].mxu0 }
 0xdd0   : > { %v3242_v50 = vpop.f32.mrb[78].mxu0 }
 0xdd1   : > { %v4114_v52 = vpop.f32.mrb[79].mxu0  ;;  %4136 = vmatmul.mubr.msk.bf16.vlgmr.msra.gmra.mrb[28].mxu0 %vm905_vm3, %v3248_v46 }
 0xe30   : > { %v3294_v55 = vpop.f32.mrb[20].mxu1 }
 0xe31   : > { %v4139_v56 = vadd.f32 %v3625_v54, %v3294_v55  ;;  %v4119_v59 = vpop.f32.mrb[21].mxu1 }
 0xe32   : > { %v3297_v60 = vpop.f32.mrb[22].mxu1 }
 0xe33   : > { %3442 = vst.msk [vmem:[%s498_s16] sm:$0xff] %vm796_vm1, %v4139_v56  ;;  %v4120_v20 = vpop.f32.mrb[23].mxu1 }
 0xe68   : > { %v3386_v61 = vpop.f32.mrb[24].mxu1 }
 0xe69   : > { %v4141_v62 = vadd.f32 %v3625_v54, %v3386_v61  ;;  %v4131_v63 = vpop.f32.mrb[25].mxu1 }
 0xe6a   : > { %v3389_v0 = vpop.f32.mrb[26].mxu1 }
 0xe6b   : > { %3444 = vst.msk [vmem:[%s498_s16 + $0x10] sm:$0xff] %vm796_vm1, %v4141_v62  ;;  %v3340_v10 = vpop.f32.mrb[24].mxu0  ;;  %v4132_v6 = vpop.f32.mrb[27].mxu1 }
 0xe6c   : > { %v4140_v1 = vadd.f32 %v3625_v54, %v3340_v10  ;;  %v4125_v2 = vpop.f32.mrb[25].mxu0 }
 0xe6d   : > { %v3343_v3 = vpop.f32.mrb[26].mxu0 }
 0xe6e   : > { %3443 = vst.msk [vmem:[%s498_s16 + $0x8] sm:$0xff] %vm796_vm1, %v4140_v1  ;;  %v4126_v4 = vpop.f32.mrb[27].mxu0 }
 0xea4   : > { %v3432_v7 = vpop.f32.mrb[28].mxu0 }
 0xea5   : > { %v4142_v5 = vadd.f32 %v3625_v54, %v3432_v7  ;;  %v4137_v9 = vpop.f32.mrb[29].mxu0 }
 0xea6   : > { %v3435_v40 = vpop.f32.mrb[30].mxu0 }
 0xea7   : > { %3445 = vst.msk [vmem:[%s498_s16 + $0x18] sm:$0xff] %vm796_vm1, %v4142_v5  ;;  %v4138_v16 = vpop.f32.mrb[31].mxu0 }
 0xea8   : > { %4409 = shalt.err (!%p4406_p12)
}
 0xea9   : > { %s4410_s21 = scalar_lea.hbm %s5239_s2, 512  ;;  %s4414_s18 = scalar_lea.hbm %s5321_s28, 1024 }
 0xeaa   : > { %p4411_p8 = scmp.ne.s32.totalorder %s5239_s2, %s4410_s21  ;;  %p4415_p10 = scmp.lt.u32.totalorder %s5239_s2, %s5321_s28 }
 0xeab   : > { %p4416_p6 = scmp.lt.u32.totalorder %s4414_s18, %s4410_s21  ;;  %p4418_p1 = scmp.lt.u32.totalorder %s4410_s21, %s5239_s2 }
 0xeac   : > { %p4412_p0 = pnand %p4411_p8, %p5322_p11 }
 0xead   : > { %p4417_p13 = por %p4416_p6, %p4415_p10 }
 0xeae   : > { %p4413_p2 = pneg %p4412_p0 }
 0xeaf   : > { %p4419_p4 = por %p4418_p1, %p4417_p13 }
 0xeb1   : > { %p4420_p5 = pnand %p4419_p4, %p4413_p2 }
 0xeb3   : > { %4423 = shalt.err (!%p4420_p5)
}
 0xeb4   : > { %s4478_s23 = smov 128   ;;  %s4479_s29 = smov 8  }
 0xeb5   : > { %4195 = dma.vmem_to_hbm [thread:$0]  (%p5322_p11), %s5234_s13, 512, %s5239_s2, %s3447_s17, %s4478_s23, %s4478_s23, %s4479_s29  }
 0xeb6 PF: > { %s5323_s12 = sld [smem:[#allocation14_spill]]  ;;  %s5324_s25 = sld [smem:[#allocation18_spill]] }
 0xeb7   : > { %p5326_p9 = scmp.ge.s32.totalorder %s4466_s24, 2 }
 0xebc   : > { %s3475_s14 = sand.u32 1, %s5323_s12   ;;  %p5325_p7 = scmp.ne.s32.totalorder %s5324_s25, 0 }
 0xebd   : > { %s3476_s19 = scalar_lea.sflag [#allocation7], %s3475_s14 }
 0xebe   : > { %p4205_p3 = pnand %p5326_p9, %p5325_p7 }
 0xec0   : > { %4449 = dma.done.wait (!%p4205_p3), %s3476_s19, 512  }
 0xec1   : > { %4451 = vsyncadd (!%p4205_p3), %s3476_s19, 4294966784  ;;  %s5327_s24 = sld [smem:[#allocation16_spill]]  ;;  %s5328_s26 = sld [smem:[#allocation15_spill]] }
 0xec2   : > { %s5329_s23 = sld [smem:[#allocation17_spill]]  ;;  %s5330_s21 = smov %s4458_s22 }
 0xec7   : > { %p28_p12 = scmp.ge.s32.totalorder %s5327_s24, 4   ;;  %s5331_s22 = smov %s5328_s26 }
 0xec9   :  { %30 = sbr.rel (!%p28_p12) target bundleno = 10 (0xa), region = 144 }
 0xed0   :  { %3481 = vsyncpa [#allocation6], 1 }
 0xed1   :  { %3483 = vsyncpa [#allocation6 + $0x1], 1 }
 0xed2   :  { %3484 = vsyncpa [#allocation9], 1 }
 0xed3   :  { %3486 = vsyncpa [#allocation9 + $0x1], 1 }
 0xed4   :  { %3487 = vsyncpa [#allocation7], 1 }
 0xed5   :  { %3489 = vsyncpa [#allocation7 + $0x1], 1 }

</bundles_post_ra>
